<compile_context>
chip_gen: v6e
topology: v6e:2x2x1
jax: 0.10.0
libtpu: 0.0.40
codegen_flags: <defaults>
</compile_context>

<pallas_src>
import functools

import jax
import jax.numpy as jnp
from jax.experimental import pallas as pl
from jax.experimental.pallas import tpu as pltpu

C_OUT = 256          # out_channels of each conv branch
KSIZES = (3, 4, 5)   # conv kernel heights
LANE = 128


def textcnn_kernel(q_ref, tbl_ref, w3_ref, b3_ref, w4_ref, b4_ref, w5_ref,
                   b5_ref, wout_ref, bout_ref, labels_ref,
                   logits_ref, preds_ref, ploss_ref, *, tb, seq_len):
    V, Dp = tbl_ref.shape
    C = logits_ref.shape[-1]

    # ---- embedding lookup as a one-hot MXU matmul ----
    q = q_ref[...]                                              # (TB*L, 1) int32
    onehot = jax.lax.broadcasted_iota(jnp.int32, (tb * seq_len, V), 1) == q
    emb = jnp.dot(onehot.astype(jnp.bfloat16), tbl_ref[...],
                  preferred_element_type=jnp.float32)           # (TB*L, Dp) f32
    emb = emb.reshape(tb, seq_len, Dp)

    # ---- 3 conv branches: im2col -> one matmul each, bias+ReLU, maxpool ----
    feats = []
    for w_ref, b_ref, k in ((w3_ref, b3_ref, 3), (w4_ref, b4_ref, 4),
                            (w5_ref, b5_ref, 5)):
        T = seq_len - k + 1
        # (TB, T, k*Dp) window slab; Dp is a multiple of 128 so the concat is
        # lane-aligned placement only.
        win = jnp.concatenate([emb[:, dk:dk + T, :] for dk in range(k)],
                              axis=-1)
        win = win.reshape(tb * T, k * Dp).astype(jnp.bfloat16)
        acc = jnp.dot(win, w_ref[...],
                      preferred_element_type=jnp.float32)       # (TB*T, C_OUT)
        acc = jnp.maximum(acc + b_ref[...], 0.0)                # bias + ReLU
        feats.append(jnp.max(acc.reshape(tb, T, C_OUT), axis=1))  # maxpool(T)
    pooled = jnp.concatenate(feats, axis=-1)                    # (TB, 3*C_OUT)
    # TODO(synk): nn.Dropout is identity at inference time; omitted here.

    # ---- final linear, single lane-dense logits write ----
    logits = jnp.dot(pooled.astype(jnp.bfloat16), wout_ref[...],
                     preferred_element_type=jnp.float32) + bout_ref[...]
    logits_ref[...] = logits                                    # (TB, C)

    # ---- softmax + per-example cross-entropy (mean taken outside) ----
    m = jnp.max(logits, axis=-1, keepdims=True)
    e = jnp.exp(logits - m)
    s = jnp.sum(e, axis=-1, keepdims=True)
    preds_ref[...] = e * pl.reciprocal(s, approx=True)

    log_z = m + jnp.log(s)                                      # (TB, 1)
    lbl = labels_ref[...]                                       # (TB, 1) int32
    hit = jax.lax.broadcasted_iota(jnp.int32, (tb, C), 1) == lbl
    picked = jnp.sum(jnp.where(hit, logits, 0.0), axis=-1, keepdims=True)
    ploss_ref[...] = log_z - picked                             # (TB, 1)


def textcnn_forward(query, labels, params):
    """Full fused forward: embedding + 3 convs + linear + softmax + CE."""
    B, L = query.shape
    V, D = params['embedding'].shape
    C = params['wout'].shape[1]
    Dp = pl.cdiv(D, LANE) * LANE

    # Lane-align (zero-pad D -> Dp) and cast MXU operands to bf16.
    tbl = jnp.pad(params['embedding'], ((0, 0), (0, Dp - D))).astype(jnp.bfloat16)
    conv_w, conv_b = [], []
    for k in KSIZES:
        w = jnp.pad(params[f'w{k}'], ((0, 0), (0, Dp - D), (0, 0)))
        conv_w.append(w.reshape(k * Dp, C_OUT).astype(jnp.bfloat16))
        conv_b.append(params[f'b{k}'].astype(jnp.float32))
    wout = params['wout'].astype(jnp.bfloat16)
    bout = params['bout'].astype(jnp.float32)

    # Batch tiling: one grid axis over B, weights resident across iterations.
    TB = min(B, 64)
    Bp = pl.cdiv(B, TB) * TB
    if Bp != B:
        query = jnp.pad(query, ((0, Bp - B), (0, 0)))
        labels = jnp.pad(labels, ((0, Bp - B),))
    q_flat = query.reshape(Bp * L, 1).astype(jnp.int32)
    lbl2d = labels.reshape(Bp, 1).astype(jnp.int32)

    def resident(*shape):
        return pl.BlockSpec(shape, lambda i: (0,) * len(shape))

    kernel = functools.partial(textcnn_kernel, tb=TB, seq_len=L)
    logits, preds, ploss = pl.pallas_call(
        kernel,
        grid=(Bp // TB,),
        in_specs=[
            pl.BlockSpec((TB * L, 1), lambda i: (i, 0)),   # query (flattened)
            resident(V, Dp),                               # embedding table
            resident(3 * Dp, C_OUT), resident(1, C_OUT),   # w3, b3
            resident(4 * Dp, C_OUT), resident(1, C_OUT),   # w4, b4
            resident(5 * Dp, C_OUT), resident(1, C_OUT),   # w5, b5
            resident(3 * C_OUT, C), resident(1, C),        # wout, bout
            pl.BlockSpec((TB, 1), lambda i: (i, 0)),       # labels
        ],
        out_specs=(
            pl.BlockSpec((TB, C), lambda i: (i, 0)),       # logits
            pl.BlockSpec((TB, C), lambda i: (i, 0)),       # softmax preds
            pl.BlockSpec((TB, 1), lambda i: (i, 0)),       # per-example CE
        ),
        out_shape=(
            jax.ShapeDtypeStruct((Bp, C), jnp.float32),
            jax.ShapeDtypeStruct((Bp, C), jnp.float32),
            jax.ShapeDtypeStruct((Bp, 1), jnp.float32),
        ),
        compiler_params=pltpu.CompilerParams(
            dimension_semantics=("parallel",),
            vmem_limit_bytes=32 * 1024 * 1024),
    )(q_flat, tbl, conv_w[0], conv_b[0], conv_w[1], conv_b[1],
      conv_w[2], conv_b[2], wout, bout, lbl2d)

    loss = jnp.mean(ploss[:B, 0])
    return {'loss': loss, 'output': logits[:B], 'preds': preds[:B]}


def reference_forward(query, labels, params):
    """Pure-JAX f32 reference of the PyTorch forward (sanity check)."""
    emb = params['embedding'][query].astype(jnp.float32)
    B, L, D = emb.shape
    feats = []
    for k in KSIZES:
        w, bias = params[f'w{k}'], params[f'b{k}']
        T = L - k + 1
        acc = jnp.zeros((B, T, C_OUT), jnp.float32)
        for dk in range(k):
            acc = acc + jnp.einsum('btd,dc->btc', emb[:, dk:dk + T, :], w[dk],
                                   precision='highest')
        acc = jax.nn.relu(acc + bias[None])
        feats.append(acc.max(axis=1))
    pooled = jnp.concatenate(feats, axis=-1)
    logits = jnp.dot(pooled, params['wout'], precision='highest') + params['bout'][0]
    preds = jax.nn.softmax(logits, axis=-1)
    logz = jax.scipy.special.logsumexp(logits, axis=-1)
    loss = jnp.mean(logz - logits[jnp.arange(B), labels])
    return loss, logits, preds


def init_params(key, num_classes, vocab_size, embedding_dim):
    ks = jax.random.split(key, 9)

    def nrm(k, shape, scale):
        return jax.random.normal(k, shape, jnp.float32) * scale

    return {
        'embedding': nrm(ks[0], (vocab_size, embedding_dim), 0.1),
        # conv weights stored as (k, D, C_out)  (PyTorch: (C_out, 1, k, D))
        'w3': nrm(ks[1], (3, embedding_dim, C_OUT), 0.05),
        'b3': nrm(ks[2], (1, C_OUT), 0.05),
        'w4': nrm(ks[3], (4, embedding_dim, C_OUT), 0.05),
        'b4': nrm(ks[4], (1, C_OUT), 0.05),
        'w5': nrm(ks[5], (5, embedding_dim, C_OUT), 0.05),
        'b5': nrm(ks[6], (1, C_OUT), 0.05),
        # final linear stored as (3*C_out, num_classes)  (PyTorch: (C, 768))
        'wout': nrm(ks[7], (3 * C_OUT, num_classes), 0.05),
        'bout': nrm(ks[8], (1, num_classes), 0.05),
    }


if __name__ == "__main__":
    # nn.Embedding(vocab_size, 100): the forward only works with
    # embedding_dim == 100 (the conv kernel width), so use exactly that.
    num_classes, vocab_size, embedding_dim, max_len = 4, 50, 100, 8
    batch = 2

    key = jax.random.PRNGKey(0)
    kp, kq, kl = jax.random.split(key, 3)
    params = init_params(kp, num_classes, vocab_size, embedding_dim)

    query = jax.random.randint(kq, (batch, max_len), 0, vocab_size, dtype=jnp.int32)
    labels = jax.random.randint(kl, (batch,), 0, num_classes, dtype=jnp.int32)

    out = textcnn_forward(query, labels, params)
    jax.block_until_ready(out)

    # Sanity check against the pure-JAX f32 reference (kernel uses bf16 MXU
    # operands with f32 accumulation, hence the 2e-2 tolerance).
    ref_loss, ref_logits, ref_preds = reference_forward(query, labels, params)
    assert jnp.allclose(out['output'], ref_logits, atol=2e-2, rtol=2e-2)
    assert jnp.allclose(out['preds'], ref_preds, atol=2e-2, rtol=2e-2)
    assert jnp.allclose(out['loss'], ref_loss, atol=2e-2, rtol=2e-2)

    print("KERNEL_OK")
</pallas_src>

<mosaic_0001>
module attributes {stable_mosaic.version = 11 : i64} {
  func.func @textcnn_kernel(%arg0: i32, %arg1: memref<16x1xi32, #tpu.memory_space<vmem>>, %arg2: memref<50x128xbf16, #tpu.memory_space<vmem>>, %arg3: memref<384x256xbf16, #tpu.memory_space<vmem>>, %arg4: memref<1x256xf32, #tpu.memory_space<vmem>>, %arg5: memref<512x256xbf16, #tpu.memory_space<vmem>>, %arg6: memref<1x256xf32, #tpu.memory_space<vmem>>, %arg7: memref<640x256xbf16, #tpu.memory_space<vmem>>, %arg8: memref<1x256xf32, #tpu.memory_space<vmem>>, %arg9: memref<768x4xbf16, #tpu.memory_space<vmem>>, %arg10: memref<1x4xf32, #tpu.memory_space<vmem>>, %arg11: memref<2x1xi32, #tpu.memory_space<vmem>>, %arg12: memref<2x4xf32, #tpu.memory_space<vmem>>, %arg13: memref<2x4xf32, #tpu.memory_space<vmem>>, %arg14: memref<2x1xf32, #tpu.memory_space<vmem>>) attributes {dimension_semantics = [#tpu.dimension_semantics<parallel>], iteration_bounds = array<i64: 1>, scalar_prefetch = 0 : i64, scratch_operands = 0 : i64, tpu.core_type = #tpu.core_type<tc>, window_params = [{transform_indices = @transform_0, window_bounds = array<i64: 16, 1>}, {pipeline_mode = #tpu.pipeline_mode<synchronous>, transform_indices = @transform_1, window_bounds = array<i64: 50, 128>}, {pipeline_mode = #tpu.pipeline_mode<synchronous>, transform_indices = @transform_2, window_bounds = array<i64: 384, 256>}, {pipeline_mode = #tpu.pipeline_mode<synchronous>, transform_indices = @transform_3, window_bounds = array<i64: 1, 256>}, {pipeline_mode = #tpu.pipeline_mode<synchronous>, transform_indices = @transform_4, window_bounds = array<i64: 512, 256>}, {pipeline_mode = #tpu.pipeline_mode<synchronous>, transform_indices = @transform_5, window_bounds = array<i64: 1, 256>}, {pipeline_mode = #tpu.pipeline_mode<synchronous>, transform_indices = @transform_6, window_bounds = array<i64: 640, 256>}, {pipeline_mode = #tpu.pipeline_mode<synchronous>, transform_indices = @transform_7, window_bounds = array<i64: 1, 256>}, {pipeline_mode = #tpu.pipeline_mode<synchronous>, transform_indices = @transform_8, window_bounds = array<i64: 768, 4>}, {pipeline_mode = #tpu.pipeline_mode<synchronous>, transform_indices = @transform_9, window_bounds = array<i64: 1, 4>}, {transform_indices = @transform_10, window_bounds = array<i64: 2, 1>}, {transform_indices = @transform_11, window_bounds = array<i64: 2, 4>}, {transform_indices = @transform_12, window_bounds = array<i64: 2, 4>}, {transform_indices = @transform_13, window_bounds = array<i64: 2, 1>}]} {
    %c0 = arith.constant 0 : index
    %c0_0 = arith.constant 0 : index
    %0 = vector.load %arg1[%c0, %c0_0] : memref<16x1xi32, #tpu.memory_space<vmem>>, vector<16x1xi32>
    %1 = tpu.iota {dimensions = array<i32: 1>} : vector<16x50xi32>
    %2 = vector.broadcast %0 : vector<16x1xi32> to vector<16x50xi32>
    %3 = arith.cmpi eq, %1, %2 : vector<16x50xi32>
    %4 = arith.extui %3 : vector<16x50xi1> to vector<16x50xi32>
    %5 = arith.sitofp %4 : vector<16x50xi32> to vector<16x50xf32>
    %6 = arith.truncf %5 : vector<16x50xf32> to vector<16x50xbf16>
    %c0_1 = arith.constant 0 : index
    %c0_2 = arith.constant 0 : index
    %7 = vector.load %arg2[%c0_1, %c0_2] : memref<50x128xbf16, #tpu.memory_space<vmem>>, vector<50x128xbf16>
    %cst = arith.constant dense<0.000000e+00> : vector<16x128xf32>
    %8 = tpu.matmul %6, %7, %cst {dimension_numbers = #tpu.dot_dimension_numbers<[1], [0], [0], [1], [0, 0, 1, 1], [], []>} : vector<16x50xbf16>, vector<50x128xbf16>, vector<16x128xf32> -> vector<16x128xf32>
    %9 = vector.shape_cast %8 : vector<16x128xf32> to vector<2x8x128xf32>
    %10 = vector.extract_strided_slice %9 {offsets = [0, 0, 0], sizes = [2, 6, 128], strides = [1, 1, 1]} : vector<2x8x128xf32> to vector<2x6x128xf32>
    %11 = vector.extract_strided_slice %9 {offsets = [0, 1, 0], sizes = [2, 6, 128], strides = [1, 1, 1]} : vector<2x8x128xf32> to vector<2x6x128xf32>
    %12 = vector.extract_strided_slice %9 {offsets = [0, 2, 0], sizes = [2, 6, 128], strides = [1, 1, 1]} : vector<2x8x128xf32> to vector<2x6x128xf32>
    %13 = tpu.concatenate %10, %11, %12 in 2 : vector<2x6x128xf32>, vector<2x6x128xf32>, vector<2x6x128xf32> -> vector<2x6x384xf32>
    %14 = vector.shape_cast %13 : vector<2x6x384xf32> to vector<12x384xf32>
    %15 = arith.truncf %14 : vector<12x384xf32> to vector<12x384xbf16>
    %c0_3 = arith.constant 0 : index
    %c0_4 = arith.constant 0 : index
    %16 = vector.load %arg3[%c0_3, %c0_4] : memref<384x256xbf16, #tpu.memory_space<vmem>>, vector<384x256xbf16>
    %cst_5 = arith.constant dense<0.000000e+00> : vector<12x256xf32>
    %17 = tpu.matmul %15, %16, %cst_5 {dimension_numbers = #tpu.dot_dimension_numbers<[1], [0], [0], [1], [0, 0, 1, 1], [], []>} : vector<12x384xbf16>, vector<384x256xbf16>, vector<12x256xf32> -> vector<12x256xf32>
    %c0_6 = arith.constant 0 : index
    %c0_7 = arith.constant 0 : index
    %18 = vector.load %arg4[%c0_6, %c0_7] : memref<1x256xf32, #tpu.memory_space<vmem>>, vector<1x256xf32>
    %19 = vector.broadcast %18 : vector<1x256xf32> to vector<12x256xf32>
    %20 = arith.addf %17, %19 : vector<12x256xf32>
    %cst_8 = arith.constant 0.000000e+00 : f32
    %21 = vector.broadcast %cst_8 : f32 to vector<12x256xf32>
    %22 = arith.maximumf %20, %21 : vector<12x256xf32>
    %23 = vector.shape_cast %22 : vector<12x256xf32> to vector<2x6x256xf32>
    %cst_9 = arith.constant dense<0xFF800000> : vector<2x256xf32>
    %24 = vector.multi_reduction <maximumf>, %23, %cst_9 [1] : vector<2x6x256xf32> to vector<2x256xf32>
    %25 = vector.extract_strided_slice %9 {offsets = [0, 0, 0], sizes = [2, 5, 128], strides = [1, 1, 1]} : vector<2x8x128xf32> to vector<2x5x128xf32>
    %26 = vector.extract_strided_slice %9 {offsets = [0, 1, 0], sizes = [2, 5, 128], strides = [1, 1, 1]} : vector<2x8x128xf32> to vector<2x5x128xf32>
    %27 = vector.extract_strided_slice %9 {offsets = [0, 2, 0], sizes = [2, 5, 128], strides = [1, 1, 1]} : vector<2x8x128xf32> to vector<2x5x128xf32>
    %28 = vector.extract_strided_slice %9 {offsets = [0, 3, 0], sizes = [2, 5, 128], strides = [1, 1, 1]} : vector<2x8x128xf32> to vector<2x5x128xf32>
    %29 = tpu.concatenate %25, %26, %27, %28 in 2 : vector<2x5x128xf32>, vector<2x5x128xf32>, vector<2x5x128xf32>, vector<2x5x128xf32> -> vector<2x5x512xf32>
    %30 = vector.shape_cast %29 : vector<2x5x512xf32> to vector<10x512xf32>
    %31 = arith.truncf %30 : vector<10x512xf32> to vector<10x512xbf16>
    %c0_10 = arith.constant 0 : index
    %c0_11 = arith.constant 0 : index
    %32 = vector.load %arg5[%c0_10, %c0_11] : memref<512x256xbf16, #tpu.memory_space<vmem>>, vector<512x256xbf16>
    %cst_12 = arith.constant dense<0.000000e+00> : vector<10x256xf32>
    %33 = tpu.matmul %31, %32, %cst_12 {dimension_numbers = #tpu.dot_dimension_numbers<[1], [0], [0], [1], [0, 0, 1, 1], [], []>} : vector<10x512xbf16>, vector<512x256xbf16>, vector<10x256xf32> -> vector<10x256xf32>
    %c0_13 = arith.constant 0 : index
    %c0_14 = arith.constant 0 : index
    %34 = vector.load %arg6[%c0_13, %c0_14] : memref<1x256xf32, #tpu.memory_space<vmem>>, vector<1x256xf32>
    %35 = vector.broadcast %34 : vector<1x256xf32> to vector<10x256xf32>
    %36 = arith.addf %33, %35 : vector<10x256xf32>
    %cst_15 = arith.constant 0.000000e+00 : f32
    %37 = vector.broadcast %cst_15 : f32 to vector<10x256xf32>
    %38 = arith.maximumf %36, %37 : vector<10x256xf32>
    %39 = vector.shape_cast %38 : vector<10x256xf32> to vector<2x5x256xf32>
    %cst_16 = arith.constant dense<0xFF800000> : vector<2x256xf32>
    %40 = vector.multi_reduction <maximumf>, %39, %cst_16 [1] : vector<2x5x256xf32> to vector<2x256xf32>
    %41 = vector.extract_strided_slice %9 {offsets = [0, 0, 0], sizes = [2, 4, 128], strides = [1, 1, 1]} : vector<2x8x128xf32> to vector<2x4x128xf32>
    %42 = vector.extract_strided_slice %9 {offsets = [0, 1, 0], sizes = [2, 4, 128], strides = [1, 1, 1]} : vector<2x8x128xf32> to vector<2x4x128xf32>
    %43 = vector.extract_strided_slice %9 {offsets = [0, 2, 0], sizes = [2, 4, 128], strides = [1, 1, 1]} : vector<2x8x128xf32> to vector<2x4x128xf32>
    %44 = vector.extract_strided_slice %9 {offsets = [0, 3, 0], sizes = [2, 4, 128], strides = [1, 1, 1]} : vector<2x8x128xf32> to vector<2x4x128xf32>
    %45 = vector.extract_strided_slice %9 {offsets = [0, 4, 0], sizes = [2, 4, 128], strides = [1, 1, 1]} : vector<2x8x128xf32> to vector<2x4x128xf32>
    %46 = tpu.concatenate %41, %42, %43, %44, %45 in 2 : vector<2x4x128xf32>, vector<2x4x128xf32>, vector<2x4x128xf32>, vector<2x4x128xf32>, vector<2x4x128xf32> -> vector<2x4x640xf32>
    %47 = vector.shape_cast %46 : vector<2x4x640xf32> to vector<8x640xf32>
    %48 = arith.truncf %47 : vector<8x640xf32> to vector<8x640xbf16>
    %c0_17 = arith.constant 0 : index
    %c0_18 = arith.constant 0 : index
    %49 = vector.load %arg7[%c0_17, %c0_18] : memref<640x256xbf16, #tpu.memory_space<vmem>>, vector<640x256xbf16>
    %cst_19 = arith.constant dense<0.000000e+00> : vector<8x256xf32>
    %50 = tpu.matmul %48, %49, %cst_19 {dimension_numbers = #tpu.dot_dimension_numbers<[1], [0], [0], [1], [0, 0, 1, 1], [], []>} : vector<8x640xbf16>, vector<640x256xbf16>, vector<8x256xf32> -> vector<8x256xf32>
    %c0_20 = arith.constant 0 : index
    %c0_21 = arith.constant 0 : index
    %51 = vector.load %arg8[%c0_20, %c0_21] : memref<1x256xf32, #tpu.memory_space<vmem>>, vector<1x256xf32>
    %52 = vector.broadcast %51 : vector<1x256xf32> to vector<8x256xf32>
    %53 = arith.addf %50, %52 : vector<8x256xf32>
    %cst_22 = arith.constant 0.000000e+00 : f32
    %54 = vector.broadcast %cst_22 : f32 to vector<8x256xf32>
    %55 = arith.maximumf %53, %54 : vector<8x256xf32>
    %56 = vector.shape_cast %55 : vector<8x256xf32> to vector<2x4x256xf32>
    %cst_23 = arith.constant dense<0xFF800000> : vector<2x256xf32>
    %57 = vector.multi_reduction <maximumf>, %56, %cst_23 [1] : vector<2x4x256xf32> to vector<2x256xf32>
    %58 = tpu.concatenate %24, %40, %57 in 1 : vector<2x256xf32>, vector<2x256xf32>, vector<2x256xf32> -> vector<2x768xf32>
    %59 = arith.truncf %58 : vector<2x768xf32> to vector<2x768xbf16>
    %c0_24 = arith.constant 0 : index
    %c0_25 = arith.constant 0 : index
    %60 = vector.load %arg9[%c0_24, %c0_25] : memref<768x4xbf16, #tpu.memory_space<vmem>>, vector<768x4xbf16>
    %cst_26 = arith.constant dense<0.000000e+00> : vector<2x4xf32>
    %61 = tpu.matmul %59, %60, %cst_26 {dimension_numbers = #tpu.dot_dimension_numbers<[1], [0], [0], [1], [0, 0, 1, 1], [], []>} : vector<2x768xbf16>, vector<768x4xbf16>, vector<2x4xf32> -> vector<2x4xf32>
    %c0_27 = arith.constant 0 : index
    %c0_28 = arith.constant 0 : index
    %62 = vector.load %arg10[%c0_27, %c0_28] : memref<1x4xf32, #tpu.memory_space<vmem>>, vector<1x4xf32>
    %63 = vector.broadcast %62 : vector<1x4xf32> to vector<2x4xf32>
    %64 = arith.addf %61, %63 : vector<2x4xf32>
    %c0_29 = arith.constant 0 : index
    %c0_30 = arith.constant 0 : index
    %65 = vector.load %arg12[%c0_29, %c0_30] : memref<2x4xf32, #tpu.memory_space<vmem>>, vector<2x4xf32>
    tpu.vector_store %arg12[%c0_29, %c0_30], %64 {strides = array<i32>} : memref<2x4xf32, #tpu.memory_space<vmem>>, vector<2x4xf32>,
    %cst_31 = arith.constant dense<0xFF800000> : vector<2xf32>
    %66 = vector.multi_reduction <maximumf>, %64, %cst_31 [1] : vector<2x4xf32> to vector<2xf32>
    %67 = vector.shape_cast %66 : vector<2xf32> to vector<2x1xf32>
    %68 = vector.broadcast %67 : vector<2x1xf32> to vector<2x4xf32>
    %69 = arith.subf %64, %68 : vector<2x4xf32>
    %70 = math.exp %69 : vector<2x4xf32>
    %cst_32 = arith.constant dense<0.000000e+00> : vector<2xf32>
    %71 = vector.multi_reduction <add>, %70, %cst_32 [1] : vector<2x4xf32> to vector<2xf32>
    %72 = vector.shape_cast %71 : vector<2xf32> to vector<2x1xf32>
    %73 = tpu.reciprocal %72 {approx = true} : vector<2x1xf32> -> vector<2x1xf32>
    %74 = vector.broadcast %73 : vector<2x1xf32> to vector<2x4xf32>
    %75 = arith.mulf %70, %74 : vector<2x4xf32>
    %c0_33 = arith.constant 0 : index
    %c0_34 = arith.constant 0 : index
    %76 = vector.load %arg13[%c0_33, %c0_34] : memref<2x4xf32, #tpu.memory_space<vmem>>, vector<2x4xf32>
    tpu.vector_store %arg13[%c0_33, %c0_34], %75 {strides = array<i32>} : memref<2x4xf32, #tpu.memory_space<vmem>>, vector<2x4xf32>,
    %77 = math.log %72 : vector<2x1xf32>
    %78 = arith.addf %67, %77 : vector<2x1xf32>
    %c0_35 = arith.constant 0 : index
    %c0_36 = arith.constant 0 : index
    %79 = vector.load %arg11[%c0_35, %c0_36] : memref<2x1xi32, #tpu.memory_space<vmem>>, vector<2x1xi32>
    %80 = tpu.iota {dimensions = array<i32: 1>} : vector<2x4xi32>
    %81 = vector.broadcast %79 : vector<2x1xi32> to vector<2x4xi32>
    %82 = arith.cmpi eq, %80, %81 : vector<2x4xi32>
    %cst_37 = arith.constant 0.000000e+00 : f32
    %83 = vector.broadcast %cst_37 : f32 to vector<2x4xf32>
    %84 = arith.select %82, %64, %83 : vector<2x4xi1>, vector<2x4xf32>
    %cst_38 = arith.constant dense<0.000000e+00> : vector<2xf32>
    %85 = vector.multi_reduction <add>, %84, %cst_38 [1] : vector<2x4xf32> to vector<2xf32>
    %86 = vector.shape_cast %85 : vector<2xf32> to vector<2x1xf32>
    %87 = arith.subf %78, %86 : vector<2x1xf32>
    %c0_39 = arith.constant 0 : index
    %c0_40 = arith.constant 0 : index
    %88 = vector.load %arg14[%c0_39, %c0_40] : memref<2x1xf32, #tpu.memory_space<vmem>>, vector<2x1xf32>
    tpu.vector_store %arg14[%c0_39, %c0_40], %87 {strides = array<i32>} : memref<2x1xf32, #tpu.memory_space<vmem>>, vector<2x1xf32>,
    return
  }
  func.func @transform_0(%arg0: i32) -> (i32, i32) {
    %c0_i32 = arith.constant 0 : i32
    %c0_i32_0 = arith.constant 0 : i32
    return %arg0, %c0_i32 : i32, i32
  }
  func.func @transform_1(%arg0: i32) -> (i32, i32) {
    %c0_i32 = arith.constant 0 : i32
    %c0_i32_0 = arith.constant 0 : i32
    %c0_i32_1 = arith.constant 0 : i32
    return %c0_i32, %c0_i32_0 : i32, i32
  }
  func.func @transform_2(%arg0: i32) -> (i32, i32) {
    %c0_i32 = arith.constant 0 : i32
    %c0_i32_0 = arith.constant 0 : i32
    %c0_i32_1 = arith.constant 0 : i32
    return %c0_i32, %c0_i32_0 : i32, i32
  }
  func.func @transform_3(%arg0: i32) -> (i32, i32) {
    %c0_i32 = arith.constant 0 : i32
    %c0_i32_0 = arith.constant 0 : i32
    %c0_i32_1 = arith.constant 0 : i32
    return %c0_i32, %c0_i32_0 : i32, i32
  }
  func.func @transform_4(%arg0: i32) -> (i32, i32) {
    %c0_i32 = arith.constant 0 : i32
    %c0_i32_0 = arith.constant 0 : i32
    %c0_i32_1 = arith.constant 0 : i32
    return %c0_i32, %c0_i32_0 : i32, i32
  }
  func.func @transform_5(%arg0: i32) -> (i32, i32) {
    %c0_i32 = arith.constant 0 : i32
    %c0_i32_0 = arith.constant 0 : i32
    %c0_i32_1 = arith.constant 0 : i32
    return %c0_i32, %c0_i32_0 : i32, i32
  }
  func.func @transform_6(%arg0: i32) -> (i32, i32) {
    %c0_i32 = arith.constant 0 : i32
    %c0_i32_0 = arith.constant 0 : i32
    %c0_i32_1 = arith.constant 0 : i32
    return %c0_i32, %c0_i32_0 : i32, i32
  }
  func.func @transform_7(%arg0: i32) -> (i32, i32) {
    %c0_i32 = arith.constant 0 : i32
    %c0_i32_0 = arith.constant 0 : i32
    %c0_i32_1 = arith.constant 0 : i32
    return %c0_i32, %c0_i32_0 : i32, i32
  }
  func.func @transform_8(%arg0: i32) -> (i32, i32) {
    %c0_i32 = arith.constant 0 : i32
    %c0_i32_0 = arith.constant 0 : i32
    %c0_i32_1 = arith.constant 0 : i32
    return %c0_i32, %c0_i32_0 : i32, i32
  }
  func.func @transform_9(%arg0: i32) -> (i32, i32) {
    %c0_i32 = arith.constant 0 : i32
    %c0_i32_0 = arith.constant 0 : i32
    %c0_i32_1 = arith.constant 0 : i32
    return %c0_i32, %c0_i32_0 : i32, i32
  }
  func.func @transform_10(%arg0: i32) -> (i32, i32) {
    %c0_i32 = arith.constant 0 : i32
    %c0_i32_0 = arith.constant 0 : i32
    return %arg0, %c0_i32 : i32, i32
  }
  func.func @transform_11(%arg0: i32) -> (i32, i32) {
    %c0_i32 = arith.constant 0 : i32
    %c0_i32_0 = arith.constant 0 : i32
    return %arg0, %c0_i32 : i32, i32
  }
  func.func @transform_12(%arg0: i32) -> (i32, i32) {
    %c0_i32 = arith.constant 0 : i32
    %c0_i32_0 = arith.constant 0 : i32
    return %arg0, %c0_i32 : i32, i32
  }
  func.func @transform_13(%arg0: i32) -> (i32, i32) {
    %c0_i32 = arith.constant 0 : i32
    %c0_i32_0 = arith.constant 0 : i32
    return %arg0, %c0_i32 : i32, i32
  }
}

</mosaic_0001>

<bundles_post_ra>
// kernel: tpu_custom_call.1
= control target key start
LH: loop header
LB: loop body
LE: loop exit
PB: predicated region body
PF: predicated region fallthrough
CT: control target
= control target key end

     0   :  { %19 = vsyncpa [#allocation3], 0  ;;  %s4489_s0 = inlined_call_operand.vmem [shape: s32[16,1], index: 0, kind: input, shape index: {}]   ;;  %s4490_s1 = inlined_call_operand.vmem [shape: bf16[50,128], index: 1, kind: input, shape index: {}]   ;;  %s4491_s2 = inlined_call_operand.vmem [shape: bf16[384,256], index: 2, kind: input, shape index: {}]   ;;  %s4492_s3 = inlined_call_operand.hbm [shape: f32[1,256], index: 3, kind: input, shape index: {}]   ;;  %s4493_s4 = inlined_call_operand.hbm [shape: bf16[512,256], index: 4, kind: input, shape index: {}]   ;;  %s4494_s5 = inlined_call_operand.hbm [shape: f32[1,256], index: 5, kind: input, shape index: {}]   ;;  %s4495_s6 = inlined_call_operand.hbm [shape: bf16[640,256], index: 6, kind: input, shape index: {}]   ;;  %s4496_s7 = inlined_call_operand.vmem [shape: f32[1,256], index: 7, kind: input, shape index: {}]   ;;  %s4497_s8 = inlined_call_operand.vmem [shape: bf16[768,4], index: 8, kind: input, shape index: {}]   ;;  %s4498_s9 = inlined_call_operand.vmem [shape: f32[1,4], index: 9, kind: input, shape index: {}]   ;;  %s4499_s10 = inlined_call_operand.vmem [shape: s32[2,1], index: 10, kind: input, shape index: {}]   ;;  %s4500_s11 = inlined_call_operand.hbm [shape: f32[2,4], index: 11, kind: output, shape index: {0}]   ;;  %s4501_s12 = inlined_call_operand.hbm [shape: f32[2,4], index: 12, kind: output, shape index: {1}]   ;;  %s4502_s13 = inlined_call_operand.vmem [shape: f32[2,1], index: 13, kind: output, shape index: {2}]  }
   0x1   :  { %20 = vsyncpa [#allocation6], 0 }
   0x2   :  { %21 = vsyncpa [#allocation9], 0 }
   0x3   :  { %22 = vsyncpa [#allocation4], 0 }
   0x4   :  { %23 = vsyncpa [#allocation12], 0  ;;  %s3852_s25 = smov [#allocation5]  }
   0x5   :  { %s45_s26 = sshll.u32 %s3852_s25, 4  ;;  %s46_s26 = int_to_ptr.vmem [resolvable:$true] %s45_s26 }
   0x6   :  { %s3730_s27 = scalar_lea.vmem %s46_s26, 8192  ;;  %p3735_p1 = scmp.lt.s32.totalorder %s46_s26, %s46_s26 }
   0x7   :  { %p3731_p0 = scmp.ne.s32.totalorder %s46_s26, %s3730_s27  ;;  %p3736_p2 = scmp.lt.s32.totalorder %s3730_s27, %s3730_s27 }
   0x9   :  { %p3737_p3 = por %p3736_p2, %p3735_p1 }
   0xb   :  { %p3738_p4 = pnand %p3737_p3, %p3731_p0 }
   0xd   :  { %3741 = shalt.err (!%p3738_p4)
}
   0xe   :  { %s3853_s28 = smov 128   ;;  %s3854_s29 = smov 8  }
   0xf   :  { %51 = dma.hbm_to_vmem [thread:$0]  %s4493_s4, 8192, %s46_s26, [#allocation6], %s3853_s28, %s3853_s28, %s3854_s29  }
  0x10   :  { %s3855_s15 = smov [#allocation2]   ;;  %s3856_s17 = smov [#allocation7]  }
  0x11   :  { %s36_s16 = sshll.u32 %s3855_s15, 4  ;;  %s58_s18 = sshll.u32 %s3856_s17, 4  ;;  %s37_s16 = int_to_ptr.vmem [resolvable:$true] %s36_s16  ;;  %s59_s18 = int_to_ptr.vmem [resolvable:$true] %s58_s18 }
  0x12   :  { %s3750_s19 = scalar_lea.vmem %s37_s16, 32  ;;  %p3755_p6 = scmp.lt.s32.totalorder %s37_s16, %s37_s16 }
  0x13   :  { %p3751_p5 = scmp.ne.s32.totalorder %s37_s16, %s3750_s19  ;;  %p3756_p7 = scmp.lt.s32.totalorder %s3750_s19, %s3750_s19 }
  0x15   :  { %p3757_p8 = por %p3756_p7, %p3755_p6 }
  0x17   :  { %p3758_p9 = pnand %p3757_p8, %p3751_p5 }
  0x19   :  { %3761 = shalt.err (!%p3758_p9)
}
  0x1a   :  { %39 = dma.hbm_to_vmem [thread:$0]  %s4492_s3, 32, %s37_s16, [#allocation3]  }
  0x1b   :  { %s3770_s22 = scalar_lea.vmem %s59_s18, 32  ;;  %p3775_p11 = scmp.lt.s32.totalorder %s59_s18, %s59_s18 }
  0x1c   :  { %p3771_p10 = scmp.ne.s32.totalorder %s59_s18, %s3770_s22  ;;  %p3776_p12 = scmp.lt.s32.totalorder %s3770_s22, %s3770_s22 }
  0x1e   :  { %p3777_p13 = por %p3776_p12, %p3775_p11 }
  0x20   :  { %p3778_p0 = pnand %p3777_p13, %p3771_p10 }
  0x22   :  { %3781 = shalt.err (!%p3778_p0)
}
  0x23   :  { %61 = dma.hbm_to_vmem [thread:$0]  %s4494_s5, 32, %s59_s18, [#allocation6]  }
  0x24   :  { %s3857_s24 = smov [#allocation8]  }
  0x25   :  { %s67_s25 = sshll.u32 %s3857_s24, 4  ;;  %s68_s25 = int_to_ptr.vmem [resolvable:$true] %s67_s25 }
  0x26   :  { %s3790_s26 = scalar_lea.vmem %s68_s25, 10240  ;;  %p3795_p2 = scmp.lt.s32.totalorder %s68_s25, %s68_s25 }
  0x27   :  { %p3791_p1 = scmp.ne.s32.totalorder %s68_s25, %s3790_s26  ;;  %p3796_p3 = scmp.lt.s32.totalorder %s3790_s26, %s3790_s26 }
  0x29   :  { %p3797_p4 = por %p3796_p3, %p3795_p2 }
  0x2b   :  { %p3798_p5 = pnand %p3797_p4, %p3791_p1 }
  0x2d   :  { %3801 = shalt.err (!%p3798_p5)
}
  0x2e   :  { %73 = dma.hbm_to_vmem [thread:$0]  %s4495_s6, 10240, %s68_s25, [#allocation9], %s3853_s28, %s3853_s28, %s3854_s29  }
  0x2f   :  { %3842 = dma.done.wait [#allocation3], 32  }
  0x30   :  { %3843 = vsyncadd [#allocation3], 4294967264 }
  0x31   :  { %3844 = dma.done.wait [#allocation6], 8224  }
  0x32   :  { %3845 = vsyncadd [#allocation6], 4294959072 }
  0x33   :  { %3846 = dma.done.wait [#allocation9], 10240  }
  0x34   :  { %3847 = vsyncadd [#allocation9], 4294957056  ;;  %v3858_v0 = vmov 0   ;;  %v3859_v1 = vmov 0.0   ;;  %v95_v2 = vld [vmem:[%s4489_s0] sm:$0xff]  ;;  %vm144_vm0 = vcmask 1040384   ;;  %v97_v32 = vlaneseq }
  0x35   :  { %3374 = vset.pattern.permute.xlu0 %v3858_v0  ;;  %3349 = vmatprep.subr.bf16.mxu0 %v3859_v1  ;;  %v96_v3 = vld [vmem:[%s4489_s0 + $0x8] sm:$0xff]  ;;  %v3376_v4 = vld [vmem:[%s4490_s1 + $0x18] ss:$0 sps:$4 sm:$0x11]   ;;  %v3377_v6 = vld [vmem:[%s4490_s1 + $0x10] sm:$0xff]   ;;  %vm3860_vm1 = vmmov 0  }
  0x36   :  { %3375 = vset.pattern.permute.xlu1 %v3858_v0  ;;  %100 = vperm.xlu0 %3374, %v95_v2   ;;  %v146_v5 = vsel %vm144_vm0, %v3376_v4, 0  ;;  %v3380_v7 = vld [vmem:[%s4491_s2 + $0x74] ss:$8 sps:$4 sm:$0xff]   ;;  %v3382_v8 = vld [vmem:[%s4491_s2 + $0x70] ss:$8 sps:$4 sm:$0xff]   ;;  %v3378_v10 = vld [vmem:[%s4490_s1 + $0x8] sm:$0xff]  }
  0x37   :  { %3350 = vmatpush3.bf16.msra.mxu0 %v146_v5  ;;  %3357 = vmatprep.mubr.msk.bf16.mxu0 %vm3860_vm1, %v3859_v1  ;;  %v3383_v9 = vld [vmem:[%s4491_s2 + $0x64] ss:$8 sps:$4 sm:$0xff]   ;;  %v3385_v11 = vld [vmem:[%s4491_s2 + $0x60] ss:$8 sps:$4 sm:$0xff]   ;;  %v3386_v12 = vld [vmem:[%s4491_s2 + $0x54] ss:$8 sps:$4 sm:$0xff]  }
  0x38   :  { %3351 = vmatprep.subr.bf16.mxu0 %v3859_v1  ;;  %624 = vmatprep.subr.bf16.mxu1 %v3380_v7  ;;  %v3379_v13 = vld [vmem:[%s4490_s1] sm:$0xff]   ;;  %v3388_v14 = vld [vmem:[%s4491_s2 + $0x50] ss:$8 sps:$4 sm:$0xff]   ;;  %v3406_v17 = vld [vmem:[%s4491_s2 + $0x174] ss:$8 sps:$4 sm:$0xff]   ;;  %v4048_v33 = vand.u32 127, %v97_v32 }
  0x39   :  { %625 = vmatpush1.bf16.msra.mxu1 %v3382_v8  ;;  %v3389_v15 = vld [vmem:[%s4491_s2 + $0x44] ss:$8 sps:$4 sm:$0xff]   ;;  %v3391_v16 = vld [vmem:[%s4491_s2 + $0x40] ss:$8 sps:$4 sm:$0xff]   ;;  %v3392_v18 = vld [vmem:[%s4491_s2 + $0x34] ss:$8 sps:$4 sm:$0xff]  }
  0x3a   :  { %103 = vperm.xlu0 %3374, %v96_v3   ;;  %626 = vmatprep.subr.bf16.mxu1 %v3383_v9  ;;  %v3394_v19 = vld [vmem:[%s4491_s2 + $0x30] ss:$8 sps:$4 sm:$0xff]   ;;  %v3395_v20 = vld [vmem:[%s4491_s2 + $0x24] ss:$8 sps:$4 sm:$0xff]   ;;  %v3397_v21 = vld [vmem:[%s4491_s2 + $0x20] ss:$8 sps:$4 sm:$0xff]  }
  0x3b   :  { %3352 = vmatpush3.bf16.msra.mxu0 %v3377_v6  ;;  %v3398_v22 = vld [vmem:[%s4491_s2 + $0x14] ss:$8 sps:$4 sm:$0xff]   ;;  %v3400_v23 = vld [vmem:[%s4491_s2 + $0x10] ss:$8 sps:$4 sm:$0xff]   ;;  %v3401_v24 = vld [vmem:[%s4491_s2 + $0x4] ss:$8 sps:$4 sm:$0xff]  }
  0x3c   :  { %3353 = vmatprep.subr.bf16.mxu0 %v3859_v1  ;;  %v3403_v25 = vld [vmem:[%s4491_s2] ss:$8 sps:$4 sm:$0xff]   ;;  %v3407_v26 = vld [vmem:[%s4491_s2 + $0xf4] ss:$8 sps:$4 sm:$0xff]   ;;  %v3409_v27 = vld [vmem:[%s4491_s2 + $0xf0] ss:$8 sps:$4 sm:$0xff]  }
  0x3d   :  { %627 = vmatpush1.bf16.msra.mxu1 %v3385_v11  ;;  %v3413_v28 = vld [vmem:[%s4491_s2 + $0xe4] ss:$8 sps:$4 sm:$0xff]   ;;  %v3415_v29 = vld [vmem:[%s4491_s2 + $0xe0] ss:$8 sps:$4 sm:$0xff]   ;;  %v3419_v30 = vld [vmem:[%s4491_s2 + $0xd4] ss:$8 sps:$4 sm:$0xff]  }
  0x3e   :  { %628 = vmatprep.subr.bf16.mxu1 %v3386_v12  ;;  %v3421_v31 = vld [vmem:[%s4491_s2 + $0xd0] ss:$8 sps:$4 sm:$0xff]   ;;  %vm140_vm4 = vcmask 408576   ;;  %v3412_v40 = vld [vmem:[%s4491_s2 + $0x164] ss:$8 sps:$4 sm:$0xff]   ;;  %v4131_v8 = vshrl.u32 %v97_v32, 7 }
  0x3f   :  { %3354 = vmatpush3.bf16.msra.mxu0 %v3378_v10  ;;  %v3404_v38 = vld [vmem:[%s4491_s2 + $0x170] ss:$8 sps:$4 sm:$0xff]   ;;  %v3410_v41 = vld [vmem:[%s4491_s2 + $0x160] ss:$8 sps:$4 sm:$0xff]   ;;  %v3418_v42 = vld [vmem:[%s4491_s2 + $0x154] ss:$8 sps:$4 sm:$0xff]  }
  0x40   :  { %3355 = vmatprep.subr.bf16.mxu0 %v3859_v1  ;;  %v3416_v43 = vld [vmem:[%s4491_s2 + $0x150] ss:$8 sps:$4 sm:$0xff]   ;;  %v3424_v44 = vld [vmem:[%s4491_s2 + $0x144] ss:$8 sps:$4 sm:$0xff]   ;;  %v3422_v45 = vld [vmem:[%s4491_s2 + $0x140] ss:$8 sps:$4 sm:$0xff]  }
  0x41   :  { %629 = vmatpush1.bf16.msra.mxu1 %v3388_v14  ;;  %v3425_v46 = vld [vmem:[%s4491_s2 + $0xc4] ss:$8 sps:$4 sm:$0xff]   ;;  %v3427_v47 = vld [vmem:[%s4491_s2 + $0xc0] ss:$8 sps:$4 sm:$0xff]   ;;  %v3430_v48 = vld [vmem:[%s4491_s2 + $0x134] ss:$8 sps:$4 sm:$0xff]  }
  0x42   :  { %630 = vmatprep.subr.bf16.mxu1 %v3389_v15  ;;  %v3428_v49 = vld [vmem:[%s4491_s2 + $0x130] ss:$8 sps:$4 sm:$0xff]   ;;  %v3431_v50 = vld [vmem:[%s4491_s2 + $0xb4] ss:$8 sps:$4 sm:$0xff]   ;;  %v3436_v52 = vld [vmem:[%s4491_s2 + $0x124] ss:$8 sps:$4 sm:$0xff]  }
  0x43   :  { %3356 = vmatpush3.bf16.msra.mxu0 %v3379_v13  ;;  %v3433_v51 = vld [vmem:[%s4491_s2 + $0xb0] ss:$8 sps:$4 sm:$0xff]   ;;  %v3434_v53 = vld [vmem:[%s4491_s2 + $0x120] ss:$8 sps:$4 sm:$0xff]   ;;  %v3437_v54 = vld [vmem:[%s4491_s2 + $0xa4] ss:$8 sps:$4 sm:$0xff]  }
  0x44   :  { %667 = vmatprep.subr.bf16.mxu0 %v3406_v17  ;;  %v3439_v55 = vld [vmem:[%s4491_s2 + $0xa0] ss:$8 sps:$4 sm:$0xff]   ;;  %v3442_v56 = vld [vmem:[%s4491_s2 + $0x114] ss:$8 sps:$4 sm:$0xff]   ;;  %v3440_v57 = vld [vmem:[%s4491_s2 + $0x110] ss:$8 sps:$4 sm:$0xff]  }
  0x45   :  { %631 = vmatpush1.bf16.msra.mxu1 %v3391_v16  ;;  %v3443_v58 = vld [vmem:[%s4491_s2 + $0x94] ss:$8 sps:$4 sm:$0xff]   ;;  %v3445_v59 = vld [vmem:[%s4491_s2 + $0x90] ss:$8 sps:$4 sm:$0xff]   ;;  %v3448_v60 = vld [vmem:[%s4491_s2 + $0x104] ss:$8 sps:$4 sm:$0xff]  }
  0x46   :  { %632 = vmatprep.subr.bf16.mxu1 %v3392_v18  ;;  %v3446_v61 = vld [vmem:[%s4491_s2 + $0x100] ss:$8 sps:$4 sm:$0xff]   ;;  %v3449_v62 = vld [vmem:[%s4491_s2 + $0x84] ss:$8 sps:$4 sm:$0xff]   ;;  %v3861_v3 = vmov 1983009808  }
  0x47   :  { %v3454_v63 = vld [vmem:[#allocation5 + $0x74] ss:$8 sps:$4 sm:$0xff]   ;;  %v199_v4 = vunpack.c.l.s4 %v3861_v3  ;;  %v3862_v5 = vmov 1966171168   ;;  %vm783_vm5 = vcmask 1045504   ;;  %vm2416_vm6 = vcmask 1041409  }
  0x48   :  { %v3457_v2 = vld [vmem:[#allocation5 + $0x174] ss:$8 sps:$4 sm:$0xff]   ;;  %v817_v6 = vunpack.c.l.s4 %v3862_v5  ;;  %vm1710_vm7 = vcmask 1044480   ;;  %vm2383_vm8 = vcmask 1043456   ;;  %vm2954_vm9 = vcmask 25600   ;;  %s3863_s25 = smov [#allocation10]  }
  0x49   :  { %633 = vmatpush1.bf16.msra.mxu1 %v3394_v19  ;;  %v200_v7 = vunpack.c.0.s8 %v199_v4  ;;  %s2989_s26 = sshll.u32 %s3863_s25, 4  ;;  %s2990_s26 = int_to_ptr.vmem [resolvable:$true] %s2989_s26 }
  0x4a   :  { %634 = vmatprep.subr.bf16.mxu1 %v3395_v20  ;;  %v818_v9 = vunpack.c.0.s8 %v817_v6  ;;  %v3452_v6 = vld [vmem:[#allocation5 + $0x70] ss:$8 sps:$4 sm:$0xff]   ;;  %p3807_p7 = scmp.lt.s32.totalorder %s2990_s26, %s2990_s26 }
  0x4b   :  { %v4134_v10 = vsub.s32 %v200_v7, %v4131_v8 }
  0x4c   :  { %v4148_v15 = vsub.s32 %v818_v9, %v4131_v8 }
  0x4d   :  { %635 = vmatpush1.bf16.msra.mxu1 %v3397_v21 }
  0x4e   :  { %636 = vmatprep.subr.bf16.mxu1 %v3398_v22 }
  0x51   :  { %637 = vmatpush1.bf16.msra.mxu1 %v3400_v23 }
  0x52   :  { %638 = vmatprep.subr.bf16.mxu1 %v3401_v24 }
  0x55   :  { %639 = vmatpush1.bf16.msra.mxu1 %v3403_v25 }
  0x56   :  { %640 = vmatprep.subr.bf16.mxu1 %v3407_v26 }
  0x59   :  { %641 = vmatpush2.bf16.msra.mxu1 %v3409_v27 }
  0x5a   :  { %642 = vmatprep.subr.bf16.mxu1 %v3413_v28 }
  0x5d   :  { %643 = vmatpush2.bf16.msra.mxu1 %v3415_v29 }
  0x5e   :  { %644 = vmatprep.subr.bf16.mxu1 %v3419_v30 }
  0x61   :  { %645 = vmatpush2.bf16.msra.mxu1 %v3421_v31 }
  0x62   :  { %646 = vmatprep.subr.bf16.mxu1 %v3425_v46 }
  0x65   :  { %647 = vmatpush2.bf16.msra.mxu1 %v3427_v47 }
  0x66   :  { %648 = vmatprep.subr.bf16.mxu1 %v3431_v50 }
  0x69   :  { %649 = vmatpush2.bf16.msra.mxu1 %v3433_v51 }
  0x6a   :  { %650 = vmatprep.subr.bf16.mxu1 %v3437_v54 }
  0x6d   :  { %651 = vmatpush2.bf16.msra.mxu1 %v3439_v55 }
  0x6e   :  { %652 = vmatprep.subr.bf16.mxu1 %v3443_v58 }
  0x71   :  { %653 = vmatpush2.bf16.msra.mxu1 %v3445_v59 }
  0x72   :  { %654 = vmatprep.subr.bf16.mxu1 %v3449_v62 }
  0xb1   :  { %v101_v34 = vpop.permute.xlu0 %100 }
  0xb2   :  { %vm105_vm2 = vcmp.eq.s32.totalorder %v4048_v33, %v101_v34 }
  0xb3   :  { %v3018_v36 = vsel %vm105_vm2, 1.0, %v3859_v1 }
  0xb5   :  { %v104_v35 = vpop.permute.xlu0 %103 }
  0xb6   :  { %vm106_vm3 = vcmp.eq.s32.totalorder %v4048_v33, %v104_v35 }
  0xb7   :  { %v3019_v37 = vsel %vm106_vm3, 1.0, %v3859_v1  ;;  %v3451_v1 = vld [vmem:[%s4491_s2 + $0x80] ss:$8 sps:$4 sm:$0xff]  }
  0xb8   :  { %v111_v39 = vpack.c.bf16 %v3019_v37, %v3018_v36  ;;  %655 = vmatpush2.bf16.msra.mxu1 %v3451_v1 }
  0xb9   :  { %1470 = vmatprep.subr.bf16.mxu1 %v3457_v2 }
  0xba   :  { %3358 = vmatmul.mubr.msk.bf16.vlgmr.msra.gmra.mxu0 %vm140_vm4, %v111_v39 }
  0xbb   :  { %668 = vmatpush1.bf16.msra.mxu0 %v3404_v38  ;;  %699 = vmatprep.mubr.bf16.mxu0 %v3858_v0 }
  0xbc   :  { %669 = vmatprep.subr.bf16.mxu0 %v3412_v40 }
  0xbf   :  { %670 = vmatpush1.bf16.msra.mxu0 %v3410_v41 }
  0xc0   :  { %671 = vmatprep.subr.bf16.mxu0 %v3418_v42 }
  0xc3   :  { %672 = vmatpush1.bf16.msra.mxu0 %v3416_v43 }
  0xc4   :  { %673 = vmatprep.subr.bf16.mxu0 %v3424_v44 }
  0xc7   :  { %674 = vmatpush1.bf16.msra.mxu0 %v3422_v45 }
  0xc8   :  { %675 = vmatprep.subr.bf16.mxu0 %v3430_v48 }
  0xcb   :  { %676 = vmatpush1.bf16.msra.mxu0 %v3428_v49 }
  0xcc   :  { %677 = vmatprep.subr.bf16.mxu0 %v3436_v52 }
  0xcf   :  { %678 = vmatpush1.bf16.msra.mxu0 %v3434_v53 }
  0xd0   :  { %679 = vmatprep.subr.bf16.mxu0 %v3442_v56 }
  0xd3   :  { %680 = vmatpush1.bf16.msra.mxu0 %v3440_v57 }
  0xd4   :  { %681 = vmatprep.subr.bf16.mxu0 %v3448_v60 }
  0xd7   :  { %682 = vmatpush1.bf16.msra.mxu0 %v3446_v61 }
  0xd8   :  { %1427 = vmatprep.subr.bf16.mxu0 %v3454_v63 }
 0x17a   :  { %v4136_v11 = vpop.f32.mrf.mxu0 }
 0x17b   :  { %v4139_v12 = vrot.slane %v4136_v11, 2  ;;  %v4142_v13 = vrot.slane %v4136_v11, 3  ;;  %v4145_v14 = vrot.slane %v4136_v11, 1 }
 0x17c   :  { %v3359_v16 = vpop.f32.mrf.mxu0 }
 0x17d   :  { %v197_v17 = vcombine.high %v4139_v12, %v4139_v12  ;;  %v218_v18 = vrot.slane %v4139_v12, %v4134_v10  ;;  %v195_v19 = vcombine.low %v4136_v11, %v4145_v14  ;;  %v196_v21 = vcombine.high %v4136_v11, %v4145_v14 }
 0x17e   :  { %v4156_v20 = vpop.f32.mrf.mxu0  ;;  %v814_v22 = vcombine.low %v4139_v12, %v4142_v13  ;;  %v815_v23 = vcombine.high %v4139_v12, %v4142_v13 }
 0x17f   :  { %v192_v24 = vrot.slane %v4156_v20, 1  ;;  %v4166_v25 = vrot.slane %v4156_v20, 2  ;;  %v4169_v26 = vrot.slane %v4156_v20, 3  ;;  %v225_v28 = vrot.slane %v197_v17, %v4134_v10 }
 0x180   :  { %v3360_v27 = vpop.f32.mrf.mxu0  ;;  %v280_v29 = vrot.slane %v218_v18, %v4134_v10  ;;  %v204_v30 = vrot.slane %v195_v19, %v4134_v10  ;;  %v822_v31 = vrot.slane %v195_v19, %v4148_v15  ;;  %v211_v37 = vrot.slane %v196_v21, %v4134_v10 }
 0x181   :  { %v230_v32 = vcombine.high %v4156_v20, %v192_v24  ;;  %v231_v34 = vcombine.high %v4166_v25, %v4166_v25  ;;  %v252_v35 = vrot.slane %v4166_v25, %v4134_v10  ;;  %v229_v36 = vcombine.low %v4156_v20, %v192_v24 }
 0x182   :  { %v829_v38 = vrot.slane %v196_v21, %v4148_v15  ;;  %v836_v39 = vrot.slane %v814_v22, %v4148_v15  ;;  %v843_v40 = vrot.slane %v815_v23, %v4148_v15  ;;  %v273_v44 = vrot.slane %v204_v30, %v4134_v10  ;;  %v3460_v21 = vld [vmem:[#allocation5 + $0x64] ss:$8 sps:$4 sm:$0xff]  }
 0x183   :  { %v245_v41 = vrot.slane %v230_v32, %v4134_v10  ;;  %v259_v42 = vrot.slane %v231_v34, %v4134_v10  ;;  %v3026_v43 = vcombine.low %v225_v28, %v252_v35  ;;  %v238_v45 = vrot.slane %v229_v36, %v4134_v10 }
 0x184   :  { %v844_v46 = vcombine.low %v822_v31, %v836_v39  ;;  %v845_v47 = vcombine.high %v822_v31, %v836_v39  ;;  %v846_v48 = vcombine.low %v829_v38, %v843_v40  ;;  %v870_v51 = vcombine.low %v4166_v25, %v4169_v26  ;;  %v3458_v38 = vld [vmem:[#allocation5 + $0x60] ss:$8 sps:$4 sm:$0xff]  }
 0x185   :  { %v262_v49 = vcombine.low %v245_v41, %v259_v42  ;;  %v294_v50 = vrot.slane %v3026_v43, %v4134_v10  ;;  %v878_v52 = vrot.slane %v229_v36, %v4148_v15  ;;  %v261_v53 = vcombine.high %v238_v45, %v252_v35  ;;  %v3466_v42 = vld [vmem:[#allocation5 + $0x54] ss:$8 sps:$4 sm:$0xff]  }
 0x186   :  { %v3025_v54 = vcombine.low %v211_v37, %v238_v45  ;;  %v853_v55 = vrot.slane %v844_v46, %v4148_v15  ;;  %v867_v56 = vrot.slane %v845_v47, %v4148_v15  ;;  %v885_v57 = vrot.slane %v230_v32, %v4148_v15  ;;  %v3455_v37 = vld [vmem:[#allocation5 + $0x170] ss:$8 sps:$4 sm:$0xff]  }
 0x187   :  { %v297_v58 = vcombine.low %v280_v29, %v294_v50  ;;  %v3028_v59 = vcombine.high %v252_v35, %v262_v49  ;;  %v892_v60 = vrot.slane %v870_v51, %v4148_v15  ;;  %v3027_v62 = vcombine.low %v261_v53, %v245_v41  ;;  %v3463_v41 = vld [vmem:[#allocation5 + $0x164] ss:$8 sps:$4 sm:$0xff]   ;;  %v3464_v49 = vld [vmem:[#allocation5 + $0x50] ss:$8 sps:$4 sm:$0xff]   ;;  %v3469_v53 = vld [vmem:[#allocation5 + $0x154] ss:$8 sps:$4 sm:$0xff]  }
 0x188   :  { %v287_v61 = vrot.slane %v3025_v54, %v4134_v10  ;;  %v871_v63 = vcombine.high %v4166_v25, %v4169_v26  ;;  %v926_v1 = vcombine.low %v853_v55, %v867_v56  ;;  %v3077_v5 = vcombine.high %v853_v55, %v867_v56  ;;  %v3472_v54 = vld [vmem:[#allocation5 + $0x44] ss:$8 sps:$4 sm:$0xff]   ;;  %v3467_v56 = vld [vmem:[#allocation5 + $0x150] ss:$8 sps:$4 sm:$0xff]  }
 0x189   :  { %v313_v2 = vrot.slane %v3028_v59, %v4134_v10  ;;  %v900_v3 = vcombine.low %v878_v52, %v892_v60  ;;  %v901_v4 = vcombine.high %v878_v52, %v892_v60  ;;  %v306_v9 = vrot.slane %v3027_v62, %v4134_v10  ;;  %v3475_v60 = vld [vmem:[#allocation5 + $0x144] ss:$8 sps:$4 sm:$0xff]   ;;  %v3478_v62 = vld [vmem:[#allocation5 + $0x34] ss:$8 sps:$4 sm:$0xff]  }
 0x18a   :  { %v296_v7 = vcombine.high %v273_v44, %v287_v61  ;;  %v860_v16 = vrot.slane %v846_v48, %v4148_v15  ;;  %v899_v17 = vrot.slane %v871_v63, %v4148_v15  ;;  %v295_v19 = vcombine.low %v273_v44, %v287_v61  ;;  %v3461_v48 = vld [vmem:[#allocation5 + $0x160] ss:$8 sps:$4 sm:$0xff]  }
 0x18b   :  { %v323_v18 = vpack.c.bf16 %v313_v2, %v297_v58  ;;  %v909_v22 = vrot.slane %v900_v3, %v4148_v15  ;;  %v923_v23 = vrot.slane %v901_v4, %v4148_v15  ;;  %v314_v27 = vcombine.high %v306_v9, %v306_v9  ;;  %v3473_v2 = vld [vmem:[#allocation5 + $0x140] ss:$8 sps:$4 sm:$0xff]   ;;  %v3476_v3 = vld [vmem:[#allocation5 + $0x30] ss:$8 sps:$4 sm:$0xff]   ;;  %v3481_v4 = vld [vmem:[#allocation5 + $0x134] ss:$8 sps:$4 sm:$0xff]  }
 0x18c   :  { %v902_v28 = vcombine.low %v885_v57, %v899_v17  ;;  %v4207_v29 = vrot.slane %v926_v1, %v4148_v15  ;;  %v4210_v30 = vrot.slane %v3077_v5, %v4148_v15  ;;  %v4213_v35 = vcombine.low %v4145_v14, %v192_v24  ;;  %v3470_v57 = vld [vmem:[#allocation5 + $0x40] ss:$8 sps:$4 sm:$0xff]   ;;  %v3484_v5 = vld [vmem:[#allocation5 + $0x24] ss:$8 sps:$4 sm:$0xff]  }
 0x18d   :  { %700 = vmatmul.mubr.bf16.vlgmr.msra.gmra.mxu0 %v323_v18  ;;  %v924_v31 = vcombine.high %v909_v22, %v909_v22  ;;  %v925_v32 = vcombine.high %v923_v23, %v923_v23  ;;  %v928_v34 = vcombine.low %v860_v16, %v909_v22  ;;  %v322_v36 = vpack.c.bf16 %v314_v27, %v296_v7  ;;  %v3482_v7 = vld [vmem:[#allocation5 + $0x20] ss:$8 sps:$4 sm:$0xff]   ;;  %v3490_v16 = vld [vmem:[#allocation5 + $0x14] ss:$8 sps:$4 sm:$0xff]   ;;  %v3488_v18 = vld [vmem:[#allocation5 + $0x10] ss:$8 sps:$4 sm:$0xff]  }
 0x18e   :  { %1428 = vmatpush1.bf16.msra.mxu0 %v3452_v6  ;;  %v916_v39 = vrot.slane %v902_v28, %v4148_v15  ;;  %v321_v40 = vpack.c.bf16 %v306_v9, %v295_v19  ;;  %v4218_v44 = vcombine.low %v4142_v13, %v4169_v26  ;;  %v959_v14 = vcombine.high %v4207_v29, %v4210_v30  ;;  %v3479_v6 = vld [vmem:[#allocation5 + $0x130] ss:$8 sps:$4 sm:$0xff]   ;;  %v3487_v9 = vld [vmem:[#allocation5 + $0x124] ss:$8 sps:$4 sm:$0xff]   ;;  %v3485_v17 = vld [vmem:[#allocation5 + $0x120] ss:$8 sps:$4 sm:$0xff]  }
 0x18f   :  { %1429 = vmatprep.subr.bf16.mxu0 %v3460_v21  ;;  %v929_v43 = vcombine.low %v923_v23, %v924_v31  ;;  %656 = vmatprep.mubr.bf16.mxu1 %v322_v36  ;;  %v4224_v45 = vcombine.low %v4136_v11, %v4156_v20  ;;  %v4227_v46 = vrot.slane %v928_v34, %v4148_v15  ;;  %v1740_v26 = vrot.slane %v4156_v20, 4  ;;  %v3493_v19 = vld [vmem:[#allocation5 + $0x114] ss:$8 sps:$4 sm:$0xff]   ;;  %v3496_v21 = vld [vmem:[#allocation5 + $0x4] ss:$8 sps:$4 sm:$0xff]  }
 0x190   :  { %v994_v24 = vcombine.low %v925_v32, %v916_v39  ;;  %657 = vmatmul.mubr.bf16.vlgmr.msra.gmra.mxu1 %v321_v40  ;;  %v4234_v13 = vcombine.low %v4139_v12, %v4166_v25  ;;  %v1739_v51 = vrot.slane %v4136_v11, 4  ;;  %v975_v25 = vrot.slane %v959_v14, %v4148_v15  ;;  %v3491_v22 = vld [vmem:[#allocation5 + $0x110] ss:$8 sps:$4 sm:$0xff]   ;;  %v3494_v23 = vld [vmem:[#allocation5] ss:$8 sps:$4 sm:$0xff]  }
 0x191   :  { %v4230_v47 = vrot.slane %v929_v43, %v4148_v15  ;;  %1471 = vmatpush1.bf16.msra.mxu1 %v3455_v37  ;;  %v3499_v27 = vld [vmem:[#allocation5 + $0x104] ss:$8 sps:$4 sm:$0xff]   ;;  %v3502_v28 = vld [vmem:[#allocation5 + $0xf4] ss:$8 sps:$4 sm:$0xff]   ;;  %v3497_v31 = vld [vmem:[#allocation5 + $0x100] ss:$8 sps:$4 sm:$0xff]  }
 0x192   :  { %1430 = vmatpush1.bf16.msra.mxu0 %v3458_v38  ;;  %v4238_v50 = vrot.slane %v994_v24, %v4148_v15  ;;  %1472 = vmatprep.subr.bf16.mxu1 %v3463_v41  ;;  %v4245_v20 = vcombine.low %v1739_v51, %v1740_v26  ;;  %v3500_v32 = vld [vmem:[#allocation5 + $0xf0] ss:$8 sps:$4 sm:$0xff]   ;;  %v3505_v34 = vld [vmem:[#allocation5 + $0x1f4] ss:$8 sps:$4 sm:$0xff]   ;;  %v3508_v36 = vld [vmem:[#allocation5 + $0xe4] ss:$8 sps:$4 sm:$0xff]  }
 0x193   :  { %1431 = vmatprep.subr.bf16.mxu0 %v3466_v42  ;;  %v961_v52 = vcombine.high %v4227_v46, %v4230_v47  ;;  %v3503_v37 = vld [vmem:[#allocation5 + $0x1f0] ss:$8 sps:$4 sm:$0xff]   ;;  %v3506_v38 = vld [vmem:[#allocation5 + $0xe0] ss:$8 sps:$4 sm:$0xff]   ;;  %v3511_v39 = vld [vmem:[#allocation5 + $0x1e4] ss:$8 sps:$4 sm:$0xff]  }
 0x194   :  { %v1002_v12 = vcombine.high %v4238_v50, %v4238_v50  ;;  %v3514_v40 = vld [vmem:[#allocation5 + $0xd4] ss:$8 sps:$4 sm:$0xff]   ;;  %v3509_v41 = vld [vmem:[#allocation5 + $0x1e0] ss:$8 sps:$4 sm:$0xff]   ;;  %v3512_v42 = vld [vmem:[#allocation5 + $0xd0] ss:$8 sps:$4 sm:$0xff]  }
 0x195   :  { %v989_v55 = vrot.slane %v961_v52, %v4148_v15  ;;  %1473 = vmatpush1.bf16.msra.mxu1 %v3461_v48  ;;  %v3517_v43 = vld [vmem:[#allocation5 + $0x1d4] ss:$8 sps:$4 sm:$0xff]   ;;  %v3520_v14 = vld [vmem:[#allocation5 + $0xc4] ss:$8 sps:$4 sm:$0xff]   ;;  %v3515_v24 = vld [vmem:[#allocation5 + $0x1d0] ss:$8 sps:$4 sm:$0xff]  }
 0x196   :  { %1432 = vmatpush1.bf16.msra.mxu0 %v3464_v49  ;;  %v1016_v11 = vrot.slane %v1002_v12, %v4148_v15  ;;  %1474 = vmatprep.subr.bf16.mxu1 %v3469_v53  ;;  %v3518_v26 = vld [vmem:[#allocation5 + $0xc0] ss:$8 sps:$4 sm:$0xff]   ;;  %v3523_v48 = vld [vmem:[#allocation5 + $0x1c4] ss:$8 sps:$4 sm:$0xff]   ;;  %v3526_v49 = vld [vmem:[#allocation5 + $0xb4] ss:$8 sps:$4 sm:$0xff]  }
 0x197   :  { %v992_v58 = vcombine.low %v975_v25, %v989_v55  ;;  %v993_v59 = vcombine.high %v975_v25, %v989_v55  ;;  %1433 = vmatprep.subr.bf16.mxu0 %v3472_v54  ;;  %v3521_v51 = vld [vmem:[#allocation5 + $0x1c0] ss:$8 sps:$4 sm:$0xff]   ;;  %v3524_v52 = vld [vmem:[#allocation5 + $0xb0] ss:$8 sps:$4 sm:$0xff]   ;;  %v3529_v53 = vld [vmem:[#allocation5 + $0x1b4] ss:$8 sps:$4 sm:$0xff]  }
 0x198   :  { %v1018_v61 = vcombine.high %v1016_v11, %v1016_v11  ;;  %v3532_v54 = vld [vmem:[#allocation5 + $0xa4] ss:$8 sps:$4 sm:$0xff]   ;;  %v3527_v12 = vld [vmem:[#allocation5 + $0x1b0] ss:$8 sps:$4 sm:$0xff]   ;;  %v3530_v25 = vld [vmem:[#allocation5 + $0xa0] ss:$8 sps:$4 sm:$0xff]  }
 0x199   :  { %v1028_v63 = vpack.c.bf16 %v1016_v11, %v992_v58  ;;  %1475 = vmatpush1.bf16.msra.mxu1 %v3467_v56  ;;  %v3535_v55 = vld [vmem:[#allocation5 + $0x1a4] ss:$8 sps:$4 sm:$0xff]   ;;  %v3538_v11 = vld [vmem:[#allocation5 + $0x94] ss:$8 sps:$4 sm:$0xff]   ;;  %v960_v56 = vcombine.low %v4227_v46, %v4230_v47  ;;  %v3533_v58 = vld [vmem:[#allocation5 + $0x1a0] ss:$8 sps:$4 sm:$0xff]   ;;  %v1009_v47 = vrot.slane %v4238_v50, %v4148_v15 }
 0x19a   :  { %v1030_v1 = vpack.c.bf16 %v1018_v61, %v993_v59  ;;  %1434 = vmatpush1.bf16.msra.mxu0 %v3470_v57  ;;  %1476 = vmatprep.subr.bf16.mxu1 %v3475_v60  ;;  %v958_v57 = vcombine.low %v4207_v29, %v4210_v30  ;;  %v3536_v59 = vld [vmem:[#allocation5 + $0x90] ss:$8 sps:$4 sm:$0xff]   ;;  %v3541_v60 = vld [vmem:[#allocation5 + $0x194] ss:$8 sps:$4 sm:$0xff]   ;;  %v3544_v61 = vld [vmem:[#allocation5 + $0x84] ss:$8 sps:$4 sm:$0xff]  }
 0x19b   :  { %1459 = vmatprep.mubr.bf16.mxu0 %v1028_v63  ;;  %1435 = vmatprep.subr.bf16.mxu0 %v3478_v62  ;;  %v982_v62 = vrot.slane %v960_v56, %v4148_v15  ;;  %v3547_v46 = vld [vmem:[#allocation5 + $0x184] ss:$8 sps:$4 sm:$0xff]   ;;  %v3550_v30 = vld [vmem:[#allocation8 + $0x74] ss:$8 sps:$4 sm:$0xff]   ;;  %v3599_v56 = vld [vmem:[#allocation8 + $0x1f0] ss:$8 sps:$4 sm:$0xff]  }
 0x19c   :  { %1502 = vmatprep.mubr.bf16.mxu1 %v1030_v1  ;;  %v968_v63 = vrot.slane %v958_v57, %v4148_v15  ;;  %v3539_v1 = vld [vmem:[#allocation5 + $0x190] ss:$8 sps:$4 sm:$0xff]   ;;  %v3602_v57 = vld [vmem:[#allocation8 + $0xe0] ss:$8 sps:$4 sm:$0xff]  }
 0x19d   :  { %1477 = vmatpush1.bf16.msra.mxu1 %v3473_v2  ;;  %v3542_v2 = vld [vmem:[#allocation5 + $0x80] ss:$8 sps:$4 sm:$0xff]  }
 0x19e   :  { %1436 = vmatpush1.bf16.msra.mxu0 %v3476_v3  ;;  %1478 = vmatprep.subr.bf16.mxu1 %v3481_v4  ;;  %v990_v29 = vcombine.low %v968_v63, %v982_v62  ;;  %v3545_v3 = vld [vmem:[#allocation5 + $0x180] ss:$8 sps:$4 sm:$0xff]   ;;  %v3548_v4 = vld [vmem:[#allocation8 + $0x70] ss:$8 sps:$4 sm:$0xff]  }
 0x19f   :  { %1437 = vmatprep.subr.bf16.mxu0 %v3484_v5 }
 0x1a0   :  { %v1027_v5 = vpack.c.bf16 %v1009_v47, %v990_v29  ;;  %v3622_v29 = vld [vmem:[#allocation8 + $0xb4] ss:$8 sps:$4 sm:$0xff]  }
 0x1a1   :  { %1479 = vmatpush1.bf16.msra.mxu1 %v3479_v6  ;;  %v991_v6 = vcombine.high %v968_v63, %v982_v62  ;;  %v3613_v62 = vld [vmem:[#allocation8 + $0x1d4] ss:$8 sps:$4 sm:$0xff]   ;;  %v3616_v63 = vld [vmem:[#allocation8 + $0xc4] ss:$8 sps:$4 sm:$0xff]  }
 0x1a2   :  { %1438 = vmatpush1.bf16.msra.mxu0 %v3482_v7  ;;  %1480 = vmatprep.subr.bf16.mxu1 %v3487_v9  ;;  %v3553_v7 = vld [vmem:[#allocation8 + $0x174] ss:$8 sps:$4 sm:$0xff]   ;;  %v3556_v9 = vld [vmem:[#allocation8 + $0x64] ss:$8 sps:$4 sm:$0xff]  }
 0x1a3   :  { %1439 = vmatprep.subr.bf16.mxu0 %v3490_v16  ;;  %v1752_v16 = vpack.c.bf16 %v4213_v35, %v4213_v35  ;;  %v3560_v35 = vld [vmem:[#allocation8 + $0x50] ss:$8 sps:$4 sm:$0xff]  }
 0x1a5   :  { %1481 = vmatpush1.bf16.msra.mxu1 %v3485_v17  ;;  %v1017_v17 = vcombine.high %v1009_v47, %v1009_v47  ;;  %v3620_v47 = vld [vmem:[#allocation8 + $0xb0] ss:$8 sps:$4 sm:$0xff]  }
 0x1a6   :  { %1440 = vmatpush1.bf16.msra.mxu0 %v3488_v18  ;;  %1482 = vmatprep.subr.bf16.mxu1 %v3493_v19  ;;  %v3551_v18 = vld [vmem:[#allocation8 + $0x170] ss:$8 sps:$4 sm:$0xff]   ;;  %v3554_v19 = vld [vmem:[#allocation8 + $0x60] ss:$8 sps:$4 sm:$0xff]  }
 0x1a7   :  { %1441 = vmatprep.subr.bf16.mxu0 %v3496_v21  ;;  %v1029_v50 = vpack.c.bf16 %v1017_v17, %v991_v6  ;;  %v3559_v21 = vld [vmem:[#allocation8 + $0x164] ss:$8 sps:$4 sm:$0xff]   ;;  %v3626_v6 = vld [vmem:[#allocation8 + $0xa0] ss:$8 sps:$4 sm:$0xff]   ;;  %v3632_v17 = vld [vmem:[#allocation8 + $0x90] ss:$8 sps:$4 sm:$0xff]  }
 0x1a9   :  { %1483 = vmatpush1.bf16.msra.mxu1 %v3491_v22  ;;  %v1754_v22 = vpack.c.bf16 %v4218_v44, %v4218_v44  ;;  %v3569_v44 = vld [vmem:[#allocation8 + $0x140] ss:$8 sps:$4 sm:$0xff]  }
 0x1aa   :  { %1442 = vmatpush1.bf16.msra.mxu0 %v3494_v23  ;;  %1484 = vmatprep.subr.bf16.mxu1 %v3499_v27  ;;  %v3562_v23 = vld [vmem:[#allocation8 + $0x54] ss:$8 sps:$4 sm:$0xff]   ;;  %v3557_v27 = vld [vmem:[#allocation8 + $0x160] ss:$8 sps:$4 sm:$0xff]  }
 0x1ab   :  { %1443 = vmatprep.subr.bf16.mxu0 %v3502_v28  ;;  %v3565_v28 = vld [vmem:[#allocation8 + $0x154] ss:$8 sps:$4 sm:$0xff]  }
 0x1ad   :  { %1485 = vmatpush1.bf16.msra.mxu1 %v3497_v31  ;;  %v3568_v31 = vld [vmem:[#allocation8 + $0x44] ss:$8 sps:$4 sm:$0xff]  }
 0x1ae   :  { %1444 = vmatpush2.bf16.msra.mxu0 %v3500_v32  ;;  %1486 = vmatprep.subr.bf16.mxu1 %v3505_v34  ;;  %v3563_v32 = vld [vmem:[#allocation8 + $0x150] ss:$8 sps:$4 sm:$0xff]   ;;  %v3566_v34 = vld [vmem:[#allocation8 + $0x40] ss:$8 sps:$4 sm:$0xff]  }
 0x1af   :  { %1445 = vmatprep.subr.bf16.mxu0 %v3508_v36  ;;  %v3571_v36 = vld [vmem:[#allocation8 + $0x144] ss:$8 sps:$4 sm:$0xff]  }
 0x1b1   :  { %1487 = vmatpush2.bf16.msra.mxu1 %v3503_v37  ;;  %v3574_v37 = vld [vmem:[#allocation8 + $0x34] ss:$8 sps:$4 sm:$0xff]  }
 0x1b2   :  { %1446 = vmatpush2.bf16.msra.mxu0 %v3506_v38  ;;  %1488 = vmatprep.subr.bf16.mxu1 %v3511_v39  ;;  %v3572_v38 = vld [vmem:[#allocation8 + $0x30] ss:$8 sps:$4 sm:$0xff]   ;;  %v3577_v39 = vld [vmem:[#allocation8 + $0x134] ss:$8 sps:$4 sm:$0xff]  }
 0x1b3   :  { %1447 = vmatprep.subr.bf16.mxu0 %v3514_v40  ;;  %v3580_v40 = vld [vmem:[#allocation8 + $0x24] ss:$8 sps:$4 sm:$0xff]  }
 0x1b5   :  { %1489 = vmatpush2.bf16.msra.mxu1 %v3509_v41  ;;  %v3575_v41 = vld [vmem:[#allocation8 + $0x130] ss:$8 sps:$4 sm:$0xff]  }
 0x1b6   :  { %1448 = vmatpush2.bf16.msra.mxu0 %v3512_v42  ;;  %1490 = vmatprep.subr.bf16.mxu1 %v3517_v43  ;;  %v3578_v42 = vld [vmem:[#allocation8 + $0x20] ss:$8 sps:$4 sm:$0xff]   ;;  %v3583_v43 = vld [vmem:[#allocation8 + $0x124] ss:$8 sps:$4 sm:$0xff]  }
 0x1b7   :  { %1449 = vmatprep.subr.bf16.mxu0 %v3520_v14  ;;  %v3586_v14 = vld [vmem:[#allocation8 + $0x14] ss:$8 sps:$4 sm:$0xff]  }
 0x1b9   :  { %1491 = vmatpush2.bf16.msra.mxu1 %v3515_v24  ;;  %v3581_v24 = vld [vmem:[#allocation8 + $0x120] ss:$8 sps:$4 sm:$0xff]  }
 0x1ba   :  { %1450 = vmatpush2.bf16.msra.mxu0 %v3518_v26  ;;  %1492 = vmatprep.subr.bf16.mxu1 %v3523_v48  ;;  %v3584_v26 = vld [vmem:[#allocation8 + $0x10] ss:$8 sps:$4 sm:$0xff]   ;;  %v3589_v48 = vld [vmem:[#allocation8 + $0x114] ss:$8 sps:$4 sm:$0xff]  }
 0x1bb   :  { %1451 = vmatprep.subr.bf16.mxu0 %v3526_v49  ;;  %v3592_v49 = vld [vmem:[#allocation8 + $0x4] ss:$8 sps:$4 sm:$0xff]  }
 0x1bd   :  { %1493 = vmatpush2.bf16.msra.mxu1 %v3521_v51  ;;  %v3587_v51 = vld [vmem:[#allocation8 + $0x110] ss:$8 sps:$4 sm:$0xff]  }
 0x1be   :  { %1452 = vmatpush2.bf16.msra.mxu0 %v3524_v52  ;;  %1494 = vmatprep.subr.bf16.mxu1 %v3529_v53  ;;  %v3590_v52 = vld [vmem:[#allocation8] ss:$8 sps:$4 sm:$0xff]   ;;  %v3595_v53 = vld [vmem:[#allocation8 + $0x104] ss:$8 sps:$4 sm:$0xff]  }
 0x1bf   :  { %1453 = vmatprep.subr.bf16.mxu0 %v3532_v54  ;;  %v3598_v54 = vld [vmem:[#allocation8 + $0xf4] ss:$8 sps:$4 sm:$0xff]  }
 0x1c1   :  { %1495 = vmatpush2.bf16.msra.mxu1 %v3527_v12  ;;  %v3593_v12 = vld [vmem:[#allocation8 + $0x100] ss:$8 sps:$4 sm:$0xff]  }
 0x1c2   :  { %1454 = vmatpush2.bf16.msra.mxu0 %v3530_v25  ;;  %1496 = vmatprep.subr.bf16.mxu1 %v3535_v55  ;;  %v3596_v25 = vld [vmem:[#allocation8 + $0xf0] ss:$8 sps:$4 sm:$0xff]   ;;  %v3601_v55 = vld [vmem:[#allocation8 + $0x1f4] ss:$8 sps:$4 sm:$0xff]  }
 0x1c3   :  { %1455 = vmatprep.subr.bf16.mxu0 %v3538_v11  ;;  %v3604_v11 = vld [vmem:[#allocation8 + $0xe4] ss:$8 sps:$4 sm:$0xff]  }
 0x1c5   :  { %1497 = vmatpush2.bf16.msra.mxu1 %v3533_v58  ;;  %v3607_v58 = vld [vmem:[#allocation8 + $0x1e4] ss:$8 sps:$4 sm:$0xff]  }
 0x1c6   :  { %1456 = vmatpush2.bf16.msra.mxu0 %v3536_v59  ;;  %1498 = vmatprep.subr.bf16.mxu1 %v3541_v60  ;;  %v3610_v59 = vld [vmem:[#allocation8 + $0xd4] ss:$8 sps:$4 sm:$0xff]   ;;  %v3605_v60 = vld [vmem:[#allocation8 + $0x1e0] ss:$8 sps:$4 sm:$0xff]  }
 0x1c7   :  { %1457 = vmatprep.subr.bf16.mxu0 %v3544_v61  ;;  %v3608_v61 = vld [vmem:[#allocation8 + $0xd0] ss:$8 sps:$4 sm:$0xff]  }
 0x1c9   :  { %1499 = vmatpush2.bf16.msra.mxu1 %v3539_v1  ;;  %v3611_v1 = vld [vmem:[#allocation8 + $0x1d0] ss:$8 sps:$4 sm:$0xff]  }
 0x1ca   :  { %1458 = vmatpush2.bf16.msra.mxu0 %v3542_v2  ;;  %1500 = vmatprep.subr.bf16.mxu1 %v3547_v46  ;;  %v3614_v2 = vld [vmem:[#allocation8 + $0xc0] ss:$8 sps:$4 sm:$0xff]   ;;  %v3619_v46 = vld [vmem:[#allocation8 + $0x1c4] ss:$8 sps:$4 sm:$0xff]  }
 0x1cb   :  { %2248 = vmatprep.subr.bf16.mxu0 %v3550_v30  ;;  %v3617_v30 = vld [vmem:[#allocation8 + $0x1c0] ss:$8 sps:$4 sm:$0xff]  }
 0x1cd   :  { %1460 = vmatmul.mubr.bf16.vlgmr.msra.gmra.mxu0 %v1027_v5  ;;  %1501 = vmatpush2.bf16.msra.mxu1 %v3545_v3  ;;  %v3625_v3 = vld [vmem:[#allocation8 + $0x1b4] ss:$8 sps:$4 sm:$0xff]   ;;  %v3623_v5 = vld [vmem:[#allocation8 + $0x1b0] ss:$8 sps:$4 sm:$0xff]  }
 0x1ce   :  { %2249 = vmatpush1.bf16.msra.mxu0 %v3548_v4  ;;  %2280 = vmatprep.mubr.bf16.mxu0 %v1752_v16  ;;  %v3628_v4 = vld [vmem:[#allocation8 + $0xa4] ss:$8 sps:$4 sm:$0xff]   ;;  %v3629_v16 = vld [vmem:[#allocation8 + $0x1a0] ss:$8 sps:$4 sm:$0xff]  }
 0x1cf   :  { %2289 = vmatprep.subr.bf16.mxu1 %v3553_v7  ;;  %2250 = vmatprep.subr.bf16.mxu0 %v3556_v9  ;;  %v3631_v7 = vld [vmem:[#allocation8 + $0x1a4] ss:$8 sps:$4 sm:$0xff]   ;;  %v3634_v9 = vld [vmem:[#allocation8 + $0x94] ss:$8 sps:$4 sm:$0xff]  }
 0x1d0   :  { %1503 = vmatmul.mubr.bf16.vlgmr.msra.gmra.mxu1 %v1029_v50  ;;  %v3640_v50 = vld [vmem:[#allocation8 + $0x84] ss:$8 sps:$4 sm:$0xff]  }
 0x1d1   :  { %2290 = vmatpush1.bf16.msra.mxu1 %v3551_v18  ;;  %2321 = vmatprep.mubr.bf16.mxu1 %v1754_v22  ;;  %v3637_v18 = vld [vmem:[#allocation8 + $0x194] ss:$8 sps:$4 sm:$0xff]   ;;  %v3643_v22 = vld [vmem:[#allocation8 + $0x184] ss:$8 sps:$4 sm:$0xff]  }
 0x1d2   :  { %2251 = vmatpush1.bf16.msra.mxu0 %v3554_v19  ;;  %2291 = vmatprep.subr.bf16.mxu1 %v3559_v21  ;;  %v3635_v19 = vld [vmem:[#allocation8 + $0x190] ss:$8 sps:$4 sm:$0xff]   ;;  %v3638_v21 = vld [vmem:[#allocation8 + $0x80] ss:$8 sps:$4 sm:$0xff]  }
 0x1d3   :  { %2252 = vmatprep.subr.bf16.mxu0 %v3562_v23  ;;  %v3646_v23 = vld [vmem:[#allocation8 + $0x274] ss:$8 sps:$4 sm:$0xff]  }
 0x1d5   :  { %2292 = vmatpush1.bf16.msra.mxu1 %v3557_v27  ;;  %v3641_v27 = vld [vmem:[#allocation8 + $0x180] ss:$8 sps:$4 sm:$0xff]  }
 0x1d6   :  { %2253 = vmatpush1.bf16.msra.mxu0 %v3560_v35  ;;  %2293 = vmatprep.subr.bf16.mxu1 %v3565_v28  ;;  %v3644_v35 = vld [vmem:[#allocation8 + $0x270] ss:$8 sps:$4 sm:$0xff]   ;;  %v1751_v28 = vpack.c.bf16 %v4224_v45, %v4224_v45 }
 0x1d7   :  { %2254 = vmatprep.subr.bf16.mxu0 %v3568_v31  ;;  %v3649_v31 = vld [vmem:[#allocation8 + $0x264] ss:$8 sps:$4 sm:$0xff]  }
 0x1d8   :  { %v3670_v45 = vld [vmem:[%s4497_s8 + $0x70] sm:$0xff]  }
 0x1d9   :  { %2294 = vmatpush1.bf16.msra.mxu1 %v3563_v32  ;;  %v3668_v32 = vld [vmem:[%s4497_s8 + $0x78] sm:$0xff]  }
 0x1da   :  { %2255 = vmatpush1.bf16.msra.mxu0 %v3566_v34  ;;  %2295 = vmatprep.subr.bf16.mxu1 %v3571_v36  ;;  %v3669_v34 = vld [vmem:[%s4497_s8 + $0x38] sm:$0xff]   ;;  %v1753_v36 = vpack.c.bf16 %v4234_v13, %v4234_v13  ;;  %v3655_v13 = vld [vmem:[#allocation8 + $0x244] ss:$8 sps:$4 sm:$0xff]  }
 0x1db   :  { %2256 = vmatprep.subr.bf16.mxu0 %v3574_v37  ;;  %v3647_v37 = vld [vmem:[#allocation8 + $0x260] ss:$8 sps:$4 sm:$0xff]  }
 0x1dd   :  { %2296 = vmatpush1.bf16.msra.mxu1 %v3569_v44  ;;  %v3652_v44 = vld [vmem:[#allocation8 + $0x254] ss:$8 sps:$4 sm:$0xff]  }
 0x1de   :  { %2257 = vmatpush1.bf16.msra.mxu0 %v3572_v38  ;;  %2297 = vmatprep.subr.bf16.mxu1 %v3577_v39  ;;  %v3671_v38 = vld [vmem:[%s4497_s8 + $0x30] sm:$0xff]  }
 0x1df   :  { %2258 = vmatprep.subr.bf16.mxu0 %v3580_v40  ;;  %v3650_v39 = vld [vmem:[#allocation8 + $0x250] ss:$8 sps:$4 sm:$0xff]   ;;  %v3673_v40 = vld [vmem:[%s4497_s8 + $0x28] sm:$0xff]  }
 0x1e1   :  { %2298 = vmatpush1.bf16.msra.mxu1 %v3575_v41  ;;  %v3653_v41 = vld [vmem:[#allocation8 + $0x240] ss:$8 sps:$4 sm:$0xff]  }
 0x1e2   :  { %2259 = vmatpush1.bf16.msra.mxu0 %v3578_v42  ;;  %2299 = vmatprep.subr.bf16.mxu1 %v3583_v43  ;;  %v3674_v42 = vld [vmem:[%s4497_s8 + $0x60] sm:$0xff]  }
 0x1e3   :  { %2260 = vmatprep.subr.bf16.mxu0 %v3586_v14  ;;  %v3658_v43 = vld [vmem:[#allocation8 + $0x234] ss:$8 sps:$4 sm:$0xff]  }
 0x1e4   :  { %v3675_v14 = vld [vmem:[%s4497_s8 + $0x20] sm:$0xff]  }
 0x1e5   :  { %2300 = vmatpush1.bf16.msra.mxu1 %v3581_v24  ;;  %v3656_v24 = vld [vmem:[#allocation8 + $0x230] ss:$8 sps:$4 sm:$0xff]  }
 0x1e6   :  { %2261 = vmatpush1.bf16.msra.mxu0 %v3584_v26  ;;  %2301 = vmatprep.subr.bf16.mxu1 %v3589_v48  ;;  %v3676_v26 = vld [vmem:[%s4497_s8 + $0x58] sm:$0xff]   ;;  %v3661_v48 = vld [vmem:[#allocation8 + $0x224] ss:$8 sps:$4 sm:$0xff]  }
 0x1e7   :  { %2262 = vmatprep.subr.bf16.mxu0 %v3592_v49  ;;  %v3677_v49 = vld [vmem:[%s4497_s8 + $0x18] sm:$0xff]  }
 0x1e9   :  { %2302 = vmatpush1.bf16.msra.mxu1 %v3587_v51  ;;  %v3659_v51 = vld [vmem:[#allocation8 + $0x220] ss:$8 sps:$4 sm:$0xff]  }
 0x1ea   :  { %2263 = vmatpush1.bf16.msra.mxu0 %v3590_v52  ;;  %2303 = vmatprep.subr.bf16.mxu1 %v3595_v53  ;;  %v3678_v52 = vld [vmem:[%s4497_s8 + $0x50] sm:$0xff]   ;;  %v3664_v53 = vld [vmem:[#allocation8 + $0x214] ss:$8 sps:$4 sm:$0xff]  }
 0x1eb   :  { %2264 = vmatprep.subr.bf16.mxu0 %v3598_v54  ;;  %v3679_v54 = vld [vmem:[%s4497_s8 + $0x10] sm:$0xff]  }
 0x1ed   :  { %2304 = vmatpush1.bf16.msra.mxu1 %v3593_v12  ;;  %v3662_v12 = vld [vmem:[#allocation8 + $0x210] ss:$8 sps:$4 sm:$0xff]  }
 0x1ee   :  { %2265 = vmatpush2.bf16.msra.mxu0 %v3596_v25  ;;  %2305 = vmatprep.subr.bf16.mxu1 %v3601_v55  ;;  %v3680_v25 = vld [vmem:[%s4497_s8 + $0x48] sm:$0xff]  }
 0x1ef   :  { %2266 = vmatprep.subr.bf16.mxu0 %v3604_v11  ;;  %v3667_v55 = vld [vmem:[#allocation8 + $0x204] ss:$8 sps:$4 sm:$0xff]  }
 0x1f0   :  { %v3681_v11 = vld [vmem:[%s4497_s8 + $0x8] sm:$0xff]  }
 0x1f1   :  { %2306 = vmatpush2.bf16.msra.mxu1 %v3599_v56  ;;  %v3665_v56 = vld [vmem:[#allocation8 + $0x200] ss:$8 sps:$4 sm:$0xff]  }
 0x1f2   :  { %2267 = vmatpush2.bf16.msra.mxu0 %v3602_v57  ;;  %2307 = vmatprep.subr.bf16.mxu1 %v3607_v58  ;;  %v3682_v57 = vld [vmem:[%s4497_s8 + $0x40] sm:$0xff]  }
 0x1f3   :  { %2268 = vmatprep.subr.bf16.mxu0 %v3610_v59  ;;  %v3683_v58 = vld [vmem:[%s4497_s8] sm:$0xff]   ;;  %v1755_v59 = vpack.c.bf16 %v4245_v20, %v4245_v20  ;;  %v3687_v20 = vld [vmem:[%s4497_s8 + $0xb0] sm:$0xff]  }
 0x1f5   :  { %2308 = vmatpush2.bf16.msra.mxu1 %v3605_v60  ;;  %v3684_v60 = vld [vmem:[%s4497_s8 + $0xf8] sm:$0xff]  }
 0x1f6   :  { %2269 = vmatpush2.bf16.msra.mxu0 %v3608_v61  ;;  %2309 = vmatprep.subr.bf16.mxu1 %v3613_v62  ;;  %v3685_v61 = vld [vmem:[%s4497_s8 + $0xb8] sm:$0xff]   ;;  %v3686_v62 = vld [vmem:[%s4497_s8 + $0xf0] sm:$0xff]  }
 0x1f7   :  { %2270 = vmatprep.subr.bf16.mxu0 %v3616_v63  ;;  %v3688_v63 = vld [vmem:[%s4497_s8 + $0xe8] sm:$0xff]  }
 0x1f9   :  { %2310 = vmatpush2.bf16.msra.mxu1 %v3611_v1  ;;  %v3689_v1 = vld [vmem:[%s4497_s8 + $0xa8] sm:$0xff]  }
 0x1fa   :  { %2271 = vmatpush2.bf16.msra.mxu0 %v3614_v2  ;;  %2311 = vmatprep.subr.bf16.mxu1 %v3619_v46  ;;  %v3690_v2 = vld [vmem:[%s4497_s8 + $0xe0] sm:$0xff]  }
 0x1fb   :  { %2272 = vmatprep.subr.bf16.mxu0 %v3622_v29  ;;  %v3691_v46 = vld [vmem:[%s4497_s8 + $0xa0] sm:$0xff]   ;;  %v3692_v29 = vld [vmem:[%s4497_s8 + $0xd8] sm:$0xff]  }
 0x1fd   :  { %2312 = vmatpush2.bf16.msra.mxu1 %v3617_v30  ;;  %v3693_v30 = vld [vmem:[%s4497_s8 + $0x98] sm:$0xff]  }
 0x1fe   :  { %2273 = vmatpush2.bf16.msra.mxu0 %v3620_v47  ;;  %2313 = vmatprep.subr.bf16.mxu1 %v3625_v3  ;;  %v3694_v47 = vld [vmem:[%s4497_s8 + $0xd0] sm:$0xff]  }
 0x1ff   :  { %2274 = vmatprep.subr.bf16.mxu0 %v3628_v4  ;;  %v3695_v3 = vld [vmem:[%s4497_s8 + $0x90] sm:$0xff]   ;;  %v3696_v4 = vld [vmem:[%s4497_s8 + $0xc8] sm:$0xff]  }
 0x201   :  { %2314 = vmatpush2.bf16.msra.mxu1 %v3623_v5  ;;  %v3697_v5 = vld [vmem:[%s4497_s8 + $0x88] sm:$0xff]  }
 0x202   :  { %2275 = vmatpush2.bf16.msra.mxu0 %v3626_v6  ;;  %2315 = vmatprep.subr.bf16.mxu1 %v3631_v7  ;;  %v3698_v6 = vld [vmem:[%s4497_s8 + $0xc0] sm:$0xff]  }
 0x203   :  { %2276 = vmatprep.subr.bf16.mxu0 %v3634_v9  ;;  %v3699_v7 = vld [vmem:[%s4497_s8 + $0x80] sm:$0xff]   ;;  %v4366_v9 = vsub.s32 0, %v4131_v8 }
 0x205   :  { %2316 = vmatpush2.bf16.msra.mxu1 %v3629_v16  ;;  %v372_v16 = vld [vmem:[#allocation2] sm:$0x3] }
 0x206   :  { %2277 = vmatpush2.bf16.msra.mxu0 %v3632_v17  ;;  %2317 = vmatprep.subr.bf16.mxu1 %v3637_v18  ;;  %v4369_v17 = vsub.s32 1, %v4131_v8  ;;  %v3700_v8 = vld [vmem:[%s4497_s8 + $0x178] sm:$0xff]  }
 0x207   :  { %2278 = vmatprep.subr.bf16.mxu0 %v3640_v50  ;;  %v377_v50 = vrot.slane %v372_v16, %v4366_v9 }
 0x209   :  { %2318 = vmatpush2.bf16.msra.mxu1 %v3635_v19  ;;  %v381_v19 = vrot.slane %v372_v16, %v4369_v17 }
 0x20a   :  { %2279 = vmatpush2.bf16.msra.mxu0 %v3638_v21  ;;  %2319 = vmatprep.subr.bf16.mxu1 %v3643_v22 }
 0x20b   :  { %2330 = vmatprep.subr.bf16.mxu0 %v3646_v23 }
 0x20d   :  { %2281 = vmatmul.mubr.bf16.vlgmr.msra.gmra.mxu0 %v1751_v28  ;;  %2320 = vmatpush2.bf16.msra.mxu1 %v3641_v27 }
 0x20e   :  { %2331 = vmatpush1.bf16.msra.mxu0 %v3644_v35  ;;  %2362 = vmatprep.mubr.bf16.mxu0 %v3858_v0  ;;  %v3672_v0 = vld [vmem:[%s4497_s8 + $0x68] sm:$0xff]  }
 0x20f   :  { %2332 = vmatprep.subr.bf16.mxu0 %v3649_v31  ;;  %3283 = vmatprep.subr.bf16.mxu1 %v3668_v32 }
 0x210   :  { %2322 = vmatmul.mubr.bf16.vlgmr.msra.gmra.mxu1 %v1753_v36 }
 0x211   :  { %3284 = vmatpush3.bf16.msra.mxu1 %v3669_v34 }
 0x212   :  { %2333 = vmatpush1.bf16.msra.mxu0 %v3647_v37  ;;  %3285 = vmatprep.subr.bf16.mxu1 %v3670_v45 }
 0x213   :  { %2334 = vmatprep.subr.bf16.mxu0 %v3652_v44 }
 0x215   :  { %3286 = vmatpush3.bf16.msra.mxu1 %v3671_v38 }
 0x216   :  { %2335 = vmatpush1.bf16.msra.mxu0 %v3650_v39  ;;  %3287 = vmatprep.subr.bf16.mxu1 %v3672_v0 }
 0x217   :  { %2336 = vmatprep.subr.bf16.mxu0 %v3655_v13 }
 0x219   :  { %3288 = vmatpush3.bf16.msra.mxu1 %v3673_v40 }
 0x21a   :  { %2337 = vmatpush1.bf16.msra.mxu0 %v3653_v41  ;;  %3289 = vmatprep.subr.bf16.mxu1 %v3674_v42 }
 0x21b   :  { %2338 = vmatprep.subr.bf16.mxu0 %v3658_v43 }
 0x21d   :  { %3290 = vmatpush3.bf16.msra.mxu1 %v3675_v14 }
 0x21e   :  { %2339 = vmatpush1.bf16.msra.mxu0 %v3656_v24  ;;  %3291 = vmatprep.subr.bf16.mxu1 %v3676_v26 }
 0x21f   :  { %2340 = vmatprep.subr.bf16.mxu0 %v3661_v48 }
 0x221   :  { %3292 = vmatpush3.bf16.msra.mxu1 %v3677_v49 }
 0x222   :  { %2341 = vmatpush1.bf16.msra.mxu0 %v3659_v51  ;;  %3293 = vmatprep.subr.bf16.mxu1 %v3678_v52 }
 0x223   :  { %2342 = vmatprep.subr.bf16.mxu0 %v3664_v53 }
 0x225   :  { %3294 = vmatpush3.bf16.msra.mxu1 %v3679_v54 }
 0x226   :  { %2343 = vmatpush1.bf16.msra.mxu0 %v3662_v12  ;;  %3295 = vmatprep.subr.bf16.mxu1 %v3680_v25 }
 0x227   :  { %2344 = vmatprep.subr.bf16.mxu0 %v3667_v55 }
 0x229   :  { %3296 = vmatpush3.bf16.msra.mxu1 %v3681_v11 }
 0x22a   :  { %2345 = vmatpush1.bf16.msra.mxu0 %v3665_v56  ;;  %3297 = vmatprep.subr.bf16.mxu1 %v3682_v57 }
 0x22b   :  { %3305 = vmatprep.subr.bf16.mxu0 %v3684_v60 }
 0x22d   :  { %2363 = vmatmul.mubr.bf16.vlgmr.msra.gmra.mxu0 %v1755_v59  ;;  %3298 = vmatpush3.bf16.msra.mxu1 %v3683_v58 }
 0x22e   :  { %3306 = vmatpush3.bf16.msra.mxu0 %v3685_v61  ;;  %3327 = vmatprep.subr.bf16.mxu1 %v3700_v8  ;;  %v3701_v8 = vld [vmem:[%s4497_s8 + $0x138] sm:$0xff]  }
 0x22f   :  { %3307 = vmatprep.subr.bf16.mxu0 %v3686_v62 }
 0x232   :  { %3308 = vmatpush3.bf16.msra.mxu0 %v3687_v20 }
 0x233   :  { %3309 = vmatprep.subr.bf16.mxu0 %v3688_v63 }
 0x236   :  { %3310 = vmatpush3.bf16.msra.mxu0 %v3689_v1 }
 0x237   :  { %3311 = vmatprep.subr.bf16.mxu0 %v3690_v2 }
 0x23a   :  { %3312 = vmatpush3.bf16.msra.mxu0 %v3691_v46 }
 0x23b   :  { %3313 = vmatprep.subr.bf16.mxu0 %v3692_v29 }
 0x23e   :  { %3314 = vmatpush3.bf16.msra.mxu0 %v3693_v30 }
 0x23f   :  { %3315 = vmatprep.subr.bf16.mxu0 %v3694_v47 }
 0x242   :  { %3316 = vmatpush3.bf16.msra.mxu0 %v3695_v3 }
 0x243   :  { %3317 = vmatprep.subr.bf16.mxu0 %v3696_v4 }
 0x246   :  { %3318 = vmatpush3.bf16.msra.mxu0 %v3697_v5 }
 0x247   :  { %3319 = vmatprep.subr.bf16.mxu0 %v3698_v6 }
 0x24a   :  { %3320 = vmatpush3.bf16.msra.mxu0 %v3699_v7 }
 0x24d   :  { %v701_v18 = vpop.f32.mrf.mxu0 }
 0x24f   :  { %v703_v21 = vpop.f32.mrf.mxu0 }
 0x250   :  { %v658_v22 = vpop.f32.mrf.mxu1 }
 0x251   :  { %v659_v23 = vadd.f32 %v658_v22, %v377_v50  ;;  %v705_v31 = vpop.f32.mrf.mxu0 }
 0x252   :  { %v660_v27 = vpop.f32.mrf.mxu1 }
 0x253   :  { %v702_v35 = vadd.f32 %v701_v18, %v659_v23  ;;  %v661_v28 = vadd.f32 %v660_v27, %v381_v19  ;;  %v707_v0 = vpop.f32.mrf.mxu0 }
 0x254   :  { %v662_v32 = vpop.f32.mrf.mxu1 }
 0x255   :  { %v704_v34 = vadd.f32 %v703_v21, %v661_v28  ;;  %v663_v36 = vadd.f32 %v662_v32, %v377_v50  ;;  %v710_v45 = vmax.f32 %v702_v35, 0.0 }
 0x256   :  { %v664_v37 = vpop.f32.mrf.mxu1 }
 0x257   :  { %v711_v44 = vmax.f32 %v704_v34, 0.0  ;;  %v706_v38 = vadd.f32 %v705_v31, %v663_v36  ;;  %v665_v39 = vadd.f32 %v664_v37, %v381_v19 }
 0x259   :  { %v718_v13 = vcombine.low %v710_v45, %v711_v44  ;;  %v719_v40 = vcombine.high %v710_v45, %v711_v44  ;;  %v708_v41 = vadd.f32 %v707_v0, %v665_v39  ;;  %v712_v14 = vmax.f32 %v706_v38, 0.0  ;;  %v3702_v45 = vld [vmem:[%s4497_s8 + $0x170] sm:$0xff]   ;;  %v3704_v38 = vld [vmem:[%s4497_s8 + $0x168] sm:$0xff]   ;;  %v3706_v0 = vld [vmem:[%s4497_s8 + $0x160] sm:$0xff]  }
 0x25a   :  { %v3703_v44 = vld [vmem:[%s4497_s8 + $0x130] sm:$0xff]   ;;  %v3705_v39 = vld [vmem:[%s4497_s8 + $0x128] sm:$0xff]  }
 0x25b   :  { %v726_v42 = vrot.slane %v718_v13, %v4134_v10  ;;  %v733_v43 = vrot.slane %v719_v40, %v4134_v10  ;;  %v713_v24 = vmax.f32 %v708_v41, 0.0  ;;  %v3707_v13 = vld [vmem:[%s4497_s8 + $0x120] sm:$0xff]   ;;  %v3708_v40 = vld [vmem:[%s4497_s8 + $0x158] sm:$0xff]  }
 0x25c   :  { %v3709_v41 = vld [vmem:[%s4497_s8 + $0x118] sm:$0xff]  }
 0x25d   :  { %v734_v26 = vcombine.high %v726_v42, %v726_v42  ;;  %v736_v48 = vcombine.low %v712_v14, %v713_v24  ;;  %v735_v49 = vcombine.high %v733_v43, %v733_v43  ;;  %v759_v54 = vrot.slane %v733_v43, %v4134_v10  ;;  %v3710_v43 = vld [vmem:[%s4497_s8 + $0x150] sm:$0xff]  }
 0x25e   :  { %v3711_v24 = vld [vmem:[%s4497_s8 + $0x110] sm:$0xff]  }
 0x25f   :  { %v745_v51 = vcombine.low %v726_v42, %v734_v26  ;;  %v743_v52 = vrot.slane %v736_v48, %v4134_v10  ;;  %v1095_v42 = vld [vmem:[#allocation7] sm:$0x3]  ;;  %v3712_v26 = vld [vmem:[%s4497_s8 + $0x148] sm:$0xff]  }
 0x260   :  { %v1100_v14 = vrot.slane %v1095_v42, %v4366_v9  ;;  %v1104_v48 = vrot.slane %v1095_v42, %v4369_v17 }
 0x261   :  { %v752_v53 = vrot.slane %v745_v51, %v4134_v10  ;;  %v744_v12 = vcombine.high %v743_v52, %v743_v52  ;;  %v762_v25 = vcombine.low %v735_v49, %v743_v52  ;;  %v3713_v52 = vld [vmem:[%s4497_s8 + $0x108] sm:$0xff]  }
 0x263   :  { %v760_v55 = vcombine.low %v752_v53, %v759_v54  ;;  %v761_v11 = vcombine.high %v752_v53, %v759_v54  ;;  %v769_v56 = vrot.slane %v762_v25, %v4134_v10  ;;  %v776_v57 = vrot.slane %v744_v12, %v4134_v10  ;;  %v3714_v54 = vld [vmem:[%s4497_s8 + $0x140] sm:$0xff]  }
 0x265   :  { %v784_v58 = vsel %vm783_vm5, %v760_v55, -inf  ;;  %v791_v59 = vsel %vm783_vm5, %v761_v11, -inf  ;;  %v777_v60 = vcombine.low %v769_v56, %v776_v57  ;;  %v778_v61 = vcombine.high %v769_v56, %v776_v57  ;;  %v3715_v56 = vld [vmem:[%s4497_s8 + $0x100] sm:$0xff]  }
 0x266   :  { %v785_v62 = vrot.slane %v784_v58, 4  ;;  %v792_v20 = vrot.slane %v791_v59, 4 }
 0x267   :  { %v798_v63 = vsel %vm783_vm5, %v777_v60, -inf  ;;  %v805_v1 = vsel %vm783_vm5, %v778_v61, -inf }
 0x268   :  { %v786_v2 = vmax.f32 %v784_v58, %v785_v62  ;;  %v799_v46 = vrot.slane %v798_v63, 4  ;;  %v793_v29 = vmax.f32 %v791_v59, %v792_v20  ;;  %v806_v30 = vrot.slane %v805_v1, 4 }
 0x26a   :  { %v787_v47 = vrot.slane %v786_v2, 2  ;;  %v800_v3 = vmax.f32 %v798_v63, %v799_v46  ;;  %v794_v4 = vrot.slane %v793_v29, 2  ;;  %v807_v5 = vmax.f32 %v805_v1, %v806_v30 }
 0x26c   :  { %v795_v6 = vmax.f32 %v793_v29, %v794_v4  ;;  %v808_v7 = vrot.slane %v807_v5, 2  ;;  %v788_v16 = vmax.f32 %v786_v2, %v787_v47  ;;  %v801_v10 = vrot.slane %v800_v3, 2 }
 0x26e   :  { %v796_v18 = vrot.slane %v795_v6, 1  ;;  %v809_v50 = vmax.f32 %v807_v5, %v808_v7  ;;  %v789_v19 = vrot.slane %v788_v16, 1  ;;  %v802_v21 = vmax.f32 %v800_v3, %v801_v10 }
 0x270   :  { %v810_v22 = vrot.slane %v809_v50, 1  ;;  %v803_v23 = vrot.slane %v802_v21, 1  ;;  %v797_v27 = vmax.f32 %v795_v6, %v796_v18  ;;  %v790_v28 = vmax.f32 %v788_v16, %v789_v19 }
 0x272   :  { %v811_v35 = vmax.f32 %v809_v50, %v810_v22  ;;  %v804_v31 = vmax.f32 %v802_v21, %v803_v23 }
 0x274   :  { %v2418_v32 = vsel %vm2416_vm6, %v811_v35, %v797_v27  ;;  %v2417_v34 = vsel %vm2416_vm6, %v804_v31, %v790_v28 }
 0x275   :  { %v2438_v36 = vpack.c.bf16 %v2418_v32, %v2418_v32  ;;  %v2437_v37 = vpack.c.bf16 %v2417_v34, %v2417_v34 }
 0x277   :  { %2866 = vmatprep.mubr.bf16.mxu1 %v2438_v36 }
 0x278   :  { %2867 = vmatmul.mubr.bf16.vlgmr.msra.gmra.mxu1 %v2437_v37 }
 0x279   :  { %3328 = vmatpush3.bf16.msra.mxu1 %v3701_v8 }
 0x27a   :  { %3329 = vmatprep.subr.bf16.mxu1 %v3702_v45 }
 0x27d   :  { %3330 = vmatpush3.bf16.msra.mxu1 %v3703_v44 }
 0x27e   :  { %3331 = vmatprep.subr.bf16.mxu1 %v3704_v38 }
 0x281   :  { %3332 = vmatpush3.bf16.msra.mxu1 %v3705_v39 }
 0x282   :  { %3333 = vmatprep.subr.bf16.mxu1 %v3706_v0 }
 0x285   :  { %3334 = vmatpush3.bf16.msra.mxu1 %v3707_v13 }
 0x286   :  { %3335 = vmatprep.subr.bf16.mxu1 %v3708_v40 }
 0x289   :  { %3336 = vmatpush3.bf16.msra.mxu1 %v3709_v41 }
 0x28a   :  { %3337 = vmatprep.subr.bf16.mxu1 %v3710_v43 }
 0x28d   :  { %v1461_v49 = vpop.f32.mrf.mxu0  ;;  %3338 = vmatpush3.bf16.msra.mxu1 %v3711_v24 }
 0x28e   :  { %v1462_v51 = vadd.f32 %v1461_v49, %v1100_v14  ;;  %3339 = vmatprep.subr.bf16.mxu1 %v3712_v26 }
 0x28f   :  { %v1463_v53 = vpop.f32.mrf.mxu0 }
 0x290   :  { %v1464_v12 = vadd.f32 %v1463_v53, %v1104_v48  ;;  %v1504_v25 = vpop.f32.mrf.mxu1 }
 0x291   :  { %v1465_v55 = vpop.f32.mrf.mxu0  ;;  %v1505_v11 = vadd.f32 %v1504_v25, %v1462_v51  ;;  %3340 = vmatpush3.bf16.msra.mxu1 %v3713_v52 }
 0x292   :  { %v1466_v57 = vadd.f32 %v1465_v55, %v1100_v14  ;;  %v1506_v58 = vpop.f32.mrf.mxu1  ;;  %3341 = vmatprep.subr.bf16.mxu1 %v3714_v54 }
 0x293   :  { %v1467_v59 = vpop.f32.mrf.mxu0  ;;  %v1507_v60 = vadd.f32 %v1506_v58, %v1464_v12  ;;  %v1513_v20 = vmax.f32 %v1505_v11, 0.0 }
 0x294   :  { %v1468_v61 = vadd.f32 %v1467_v59, %v1104_v48  ;;  %v1508_v62 = vpop.f32.mrf.mxu1 }
 0x295   :  { %v1514_v63 = vmax.f32 %v1507_v60, 0.0  ;;  %3342 = vmatpush3.bf16.msra.mxu1 %v3715_v56  ;;  %v1509_v1 = vadd.f32 %v1508_v62, %v1466_v57 }
 0x296   :  { %v1510_v2 = vpop.f32.mrf.mxu1 }
 0x297   :  { %v1521_v46 = vcombine.low %v1513_v20, %v1514_v63  ;;  %v1522_v29 = vcombine.high %v1513_v20, %v1514_v63  ;;  %v1511_v30 = vadd.f32 %v1510_v2, %v1468_v61  ;;  %v1515_v5 = vmax.f32 %v1509_v1, 0.0 }
 0x299   :  { %v1529_v47 = vrot.slane %v1521_v46, %v4148_v15  ;;  %v1536_v3 = vrot.slane %v1522_v29, %v4148_v15  ;;  %v1516_v4 = vmax.f32 %v1511_v30, 0.0 }
 0x29b   :  { %v1537_v6 = vcombine.high %v1529_v47, %v1529_v47  ;;  %v1538_v7 = vcombine.high %v1536_v3, %v1536_v3  ;;  %v1552_v16 = vrot.slane %v1536_v3, %v4148_v15  ;;  %v1545_v10 = vrot.slane %v1529_v47, %v4148_v15 }
 0x29c   :  { %v1571_v18 = vcombine.low %v1515_v5, %v1516_v4 }
 0x29d   :  { %v1559_v50 = vrot.slane %v1537_v6, %v4148_v15  ;;  %v1566_v19 = vrot.slane %v1538_v7, %v4148_v15  ;;  %v1568_v21 = vcombine.high %v1552_v16, %v1552_v16  ;;  %v1616_v22 = vrot.slane %v1552_v16, %v4148_v15 }
 0x29e   :  { %v1578_v23 = vrot.slane %v1571_v18, %v4148_v15 }
 0x29f   :  { %v1594_v27 = vcombine.low %v1545_v10, %v1559_v50  ;;  %v3142_v35 = vcombine.high %v1545_v10, %v1559_v50  ;;  %v1650_v28 = vcombine.low %v1566_v19, %v1568_v21  ;;  %v1570_v31 = vcombine.high %v1566_v19, %v1566_v19 }
 0x2a0   :  { %v1579_v32 = vcombine.high %v1578_v23, %v1578_v23  ;;  %v1586_v34 = vrot.slane %v1578_v23, %v4148_v15  ;;  %v1619_v8 = vcombine.high %v1616_v22, %v1616_v22  ;;  %v1640_v43 = vrot.slane %v1616_v22, %v4148_v15 }
 0x2a1   :  { %v1602_v36 = vrot.slane %v1594_v27, %v4148_v15  ;;  %v1609_v37 = vrot.slane %v3142_v35, %v4148_v15  ;;  %v1658_v0 = vrot.slane %v1650_v28, %v4148_v15 }
 0x2a2   :  { %v1593_v45 = vrot.slane %v1579_v32, %v4148_v15  ;;  %v1651_v44 = vcombine.low %v1570_v31, %v1586_v34  ;;  %v1647_v14 = vrot.slane %v1619_v8, %v4148_v15 }
 0x2a3   :  { %v1617_v38 = vcombine.low %v1602_v36, %v1609_v37  ;;  %v1618_v39 = vcombine.high %v1602_v36, %v1609_v37 }
 0x2a4   :  { %v1665_v13 = vrot.slane %v1651_v44, %v4148_v15  ;;  %v1672_v40 = vrot.slane %v1593_v45, %v4148_v15  ;;  %v1836_v44 = vld [vmem:[%s4496_s7] sm:$0x3] }
 0x2a5   :  { %v1626_v41 = vrot.slane %v1617_v38, %v4148_v15  ;;  %v1633_v42 = vrot.slane %v1618_v39, %v4148_v15  ;;  %v1841_v38 = vrot.slane %v1836_v44, %v4366_v9  ;;  %v1845_v39 = vrot.slane %v1836_v44, %v4369_v17 }
 0x2a6   :  { %v1673_v24 = vcombine.low %v1658_v0, %v1665_v13  ;;  %v1674_v26 = vcombine.high %v1658_v0, %v1665_v13  ;;  %v1675_v48 = vcombine.high %v1672_v40, %v1672_v40  ;;  %v1696_v54 = vrot.slane %v1672_v40, %v4148_v15 }
 0x2a7   :  { %v1648_v49 = vcombine.low %v1626_v41, %v1640_v43  ;;  %v1649_v51 = vcombine.low %v1633_v42, %v1647_v14 }
 0x2a8   :  { %v1682_v52 = vrot.slane %v1673_v24, %v4148_v15  ;;  %v1689_v53 = vrot.slane %v1674_v26, %v4148_v15  ;;  %v1703_v12 = vrot.slane %v1675_v48, %v4148_v15 }
 0x2a9   :  { %v1711_v25 = vsel %vm1710_vm7, %v1648_v49, -inf  ;;  %v1718_v55 = vsel %vm1710_vm7, %v1649_v51, -inf }
 0x2aa   :  { %v1712_v11 = vrot.slane %v1711_v25, 4  ;;  %v1704_v56 = vcombine.low %v1682_v52, %v1696_v54  ;;  %v1705_v57 = vcombine.low %v1689_v53, %v1703_v12  ;;  %v1719_v58 = vrot.slane %v1718_v55, 4 }
 0x2ac   :  { %v1713_v59 = vmax.f32 %v1711_v25, %v1712_v11  ;;  %v1725_v60 = vsel %vm1710_vm7, %v1704_v56, -inf  ;;  %v1720_v61 = vmax.f32 %v1718_v55, %v1719_v58  ;;  %v1732_v62 = vsel %vm1710_vm7, %v1705_v57, -inf }
 0x2ad   :  { %v1726_v20 = vrot.slane %v1725_v60, 4  ;;  %v1733_v63 = vrot.slane %v1732_v62, 4 }
 0x2ae   :  { %v1721_v1 = vrot.slane %v1720_v61, 2  ;;  %v1714_v2 = vrot.slane %v1713_v59, 2 }
 0x2af   :  { %v1734_v46 = vmax.f32 %v1732_v62, %v1733_v63  ;;  %v1727_v15 = vmax.f32 %v1725_v60, %v1726_v20 }
 0x2b0   :  { %v1722_v29 = vmax.f32 %v1720_v61, %v1721_v1  ;;  %v1715_v30 = vmax.f32 %v1713_v59, %v1714_v2 }
 0x2b1   :  { %v1735_v47 = vrot.slane %v1734_v46, 2  ;;  %v1728_v3 = vrot.slane %v1727_v15, 2 }
 0x2b2   :  { %v1723_v4 = vrot.slane %v1722_v29, 1  ;;  %v1716_v6 = vrot.slane %v1715_v30, 1 }
 0x2b3   :  { %v1736_v5 = vmax.f32 %v1734_v46, %v1735_v47  ;;  %v1729_v7 = vmax.f32 %v1727_v15, %v1728_v3 }
 0x2b4   :  { %v1724_v18 = vmax.f32 %v1722_v29, %v1723_v4  ;;  %v1717_v19 = vmax.f32 %v1715_v30, %v1716_v6 }
 0x2b5   :  { %v1737_v16 = vrot.slane %v1736_v5, 1  ;;  %v1730_v10 = vrot.slane %v1729_v7, 1 }
 0x2b7   :  { %v1738_v50 = vmax.f32 %v1736_v5, %v1737_v16  ;;  %v1731_v21 = vmax.f32 %v1729_v7, %v1730_v10 }
 0x2b9   :  { %v2426_v22 = vsel %vm2416_vm6, %v1738_v50, %v1724_v18  ;;  %v2425_v23 = vsel %vm2416_vm6, %v1731_v21, %v1717_v19 }
 0x2ba   :  { %v2440_v27 = vpack.c.bf16 %v2426_v22, %v2426_v22  ;;  %v2439_v35 = vpack.c.bf16 %v2425_v23, %v2425_v23 }
 0x2bc   :  { %2906 = vmatprep.mubr.bf16.mxu0 %v2440_v27 }
 0x2bd   :  { %2907 = vmatmul.mubr.bf16.vlgmr.msra.gmra.mxu0 %v2439_v35 }
 0x2cd   :  { %v2282_v28 = vpop.f32.mrf.mxu0 }
 0x2ce   :  { %v2283_v0 = vadd.f32 %v2282_v28, %v1841_v38 }
 0x2cf   :  { %v2284_v31 = vpop.f32.mrf.mxu0 }
 0x2d0   :  { %v2323_v32 = vpop.f32.mrf.mxu1  ;;  %v2285_v13 = vadd.f32 %v2284_v31, %v1845_v39  ;;  %v3229_v31 = vld [vmem:[%s4498_s9] ss:$0 sm:$0xff] }
 0x2d1   :  { %v2286_v34 = vpop.f32.mrf.mxu0  ;;  %v2324_v40 = vadd.f32 %v2323_v32, %v2283_v0 }
 0x2d2   :  { %v2325_v36 = vpop.f32.mrf.mxu1 }
 0x2d3   :  { %v2287_v37 = vpop.f32.mrf.mxu0  ;;  %v2326_v42 = vadd.f32 %v2325_v36, %v2285_v13 }
 0x2d4   :  { %v2327_v8 = vpop.f32.mrf.mxu1 }
 0x2d6   :  { %v2328_v45 = vpop.f32.mrf.mxu1 }
 0x2ed   :  { %v2364_v41 = vpop.f32.mrf.mxu0 }
 0x2ee   :  { %v2365_v43 = vadd.f32 %v2364_v41, %v2324_v40 }
 0x2ef   :  { %v2366_v14 = vpop.f32.mrf.mxu0 }
 0x2f0   :  { %v2367_v24 = vadd.f32 %v2366_v14, %v2326_v42  ;;  %v2371_v48 = vmax.f32 %v2365_v43, 0.0  ;;  %v2971_v43 = vld [vmem:[%s4499_s10] sm:$0x3]  ;;  %s3802_s10 = scalar_lea.vmem %s2990_s26, 32 }
 0x2f1   :  { %v2368_v26 = vpop.f32.mrf.mxu0  ;;  %p3803_p6 = scmp.ne.s32.totalorder %s2990_s26, %s3802_s10  ;;  %p3808_p8 = scmp.lt.s32.totalorder %s3802_s10, %s3802_s10 }
 0x2f2   :  { %v2372_v49 = vmax.f32 %v2367_v24, 0.0 }
 0x2f3   :  { %v2369_v51 = vpop.f32.mrf.mxu0  ;;  %p3809_p9 = por %p3808_p8, %p3807_p7 }
 0x2f4   :  { %v2375_v52 = vcombine.low %v2371_v48, %v2372_v49  ;;  %v2376_v53 = vcombine.high %v2371_v48, %v2372_v49  ;;  %v3227_v54 = vcombine.low %v2372_v49, %v2372_v49  ;;  %v3228_v12 = vcombine.high %v2372_v49, %v2372_v49 }
 0x2f5   :  { %p3810_p10 = pnand %p3809_p9, %p3803_p6 }
 0x2f6   :  { %v2384_v9 = vsel %vm2383_vm8, %v2375_v52, -inf  ;;  %v2391_v25 = vsel %vm2383_vm8, %v3227_v54, -inf  ;;  %v2398_v17 = vsel %vm2383_vm8, %v2376_v53, -inf  ;;  %v2405_v55 = vsel %vm2383_vm8, %v3228_v12, -inf }
 0x2f7   :  { %v2385_v11 = vrot.slane %v2384_v9, 4  ;;  %v2392_v56 = vrot.slane %v2391_v25, 4  ;;  %v2399_v57 = vrot.slane %v2398_v17, 4  ;;  %v2406_v58 = vrot.slane %v2405_v55, 4 }
 0x2f9   :  { %v2386_v59 = vmax.f32 %v2384_v9, %v2385_v11  ;;  %v2393_v60 = vmax.f32 %v2391_v25, %v2392_v56  ;;  %v2400_v61 = vmax.f32 %v2398_v17, %v2399_v57  ;;  %v2407_v62 = vmax.f32 %v2405_v55, %v2406_v58 }
 0x2fb   :  { %v2387_v20 = vrot.slane %v2386_v59, 2  ;;  %v2401_v63 = vrot.slane %v2400_v61, 2  ;;  %v2394_v1 = vrot.slane %v2393_v60, 2  ;;  %v2408_v2 = vrot.slane %v2407_v62, 2 }
 0x2fd   :  { %v2388_v46 = vmax.f32 %v2386_v59, %v2387_v20  ;;  %v2402_v15 = vmax.f32 %v2400_v61, %v2401_v63  ;;  %v2395_v29 = vmax.f32 %v2393_v60, %v2394_v1  ;;  %v2409_v30 = vmax.f32 %v2407_v62, %v2408_v2 }
 0x2ff   :  { %v2396_v47 = vrot.slane %v2395_v29, 1  ;;  %v2410_v3 = vrot.slane %v2409_v30, 1  ;;  %v2389_v4 = vrot.slane %v2388_v46, 1  ;;  %v2403_v5 = vrot.slane %v2402_v15, 1 }
 0x301   :  { %v2397_v6 = vmax.f32 %v2395_v29, %v2396_v47  ;;  %v2411_v7 = vmax.f32 %v2409_v30, %v2410_v3  ;;  %v2390_v16 = vmax.f32 %v2388_v46, %v2389_v4  ;;  %v2404_v10 = vmax.f32 %v2402_v15, %v2403_v5 }
 0x303   :  { %v2434_v18 = vsel %vm2416_vm6, %v2411_v7, %v2397_v6  ;;  %v2433_v50 = vsel %vm2416_vm6, %v2404_v10, %v2390_v16 }
 0x304   :  { %v2442_v19 = vpack.c.bf16 %v2434_v18, %v2434_v18  ;;  %v2441_v21 = vpack.c.bf16 %v2433_v50, %v2433_v50 }
 0x306   :  { %2946 = vmatprep.mubr.bf16.mxu1 %v2442_v19 }
 0x307   :  { %2947 = vmatmul.mubr.bf16.vlgmr.msra.gmra.mxu1 %v2441_v21 }
 0x338   :  { %v3299_v22 = vpop.f32.mrf.mxu1 }
 0x33a   :  { %v3300_v23 = vpop.f32.mrf.mxu1 }
 0x33b   :  { %v3301_v27 = vadd.f32 %v3300_v23, %v3299_v22 }
 0x33c   :  { %v3302_v35 = vpop.f32.mrf.mxu1 }
 0x33d   :  { %v2869_v36 = vadd.f32 %v3301_v27, %v3229_v31 }
 0x33e   :  { %v3303_v28 = vpop.f32.mrf.mxu1 }
 0x37d   :  { %v3321_v32 = vpop.f32.mrf.mxu0 }
 0x37f   :  { %v3322_v34 = vpop.f32.mrf.mxu0 }
 0x380   :  { %v3323_v37 = vadd.f32 %v3322_v34, %v3321_v32 }
 0x381   :  { %v3324_v8 = vpop.f32.mrf.mxu0 }
 0x382   :  { %v2909_v45 = vadd.f32 %v3323_v37, %v2869_v36 }
 0x383   :  { %v3325_v44 = vpop.f32.mrf.mxu0 }
 0x3c7   :  { %v3343_v38 = vpop.f32.mrf.mxu1 }
 0x3c9   :  { %v3344_v39 = vpop.f32.mrf.mxu1 }
 0x3ca   :  { %v3345_v0 = vadd.f32 %v3344_v39, %v3343_v38 }
 0x3cb   :  { %v3346_v13 = vpop.f32.mrf.mxu1 }
 0x3cc   :  { %v2949_v40 = vadd.f32 %v3345_v0, %v2909_v45 }
 0x3cd   :  { %v3347_v41 = vpop.f32.mrf.mxu1 }
 0x3ce   :  { %v2956_v42 = vsel %vm2954_vm9, %v2949_v40, -inf  ;;  %2955 = vst.msk [vmem:[#allocation10] sm:$0x3] %vm2954_vm9, %v2949_v40 }
 0x3cf   :  { %2957 = vmax.xlane.f32.xlu1 %v2956_v42 }
 0x3e0   :  { %2973 = vperm.xlu1 %3375, %v2971_v43  }
 0x458   :  { %v2958_v14 = vpop.xlane.xlu1 %2957 }
 0x459   :  { %v2959_v24 = vsub.f32 %v2949_v40, %v2958_v14 }
 0x45b   :  { %v2960_v26 = vmul.f32 1.442695, %v2959_v24 }
 0x45c   :  { %v2974_v48 = vpop.permute.xlu1 %2973 }
 0x45d   :  { %3716 = vpow2.f32 %v2960_v26  ;;  %vm2975_vm10 = vcmp.eq.s32.totalorder %v4048_v33, %v2974_v48 }
 0x45e   :  { %v2976_v49 = vsel %vm2975_vm10, %v2949_v40, 0.0 }
 0x45f   :  { %v2977_v51 = vsel %vm2954_vm9, %v2976_v49, 0.0 }
 0x460   :  { %2978 = vadd.xlane.f32.xlu1 %v2977_v51 }
 0x46a   :  { %v3717_v52 = vpop.eup %3716 }
 0x46b   :  { %v2962_v53 = vsel %vm2954_vm9, %v3717_v52, 0.0 }
 0x46c   :  { %2963 = vadd.xlane.f32.xlu0 %v2962_v53 }
 0x46d   :  { %3813 = shalt.err (!%p3810_p10)
}
 0x46e   :  { %2992 = dma.vmem_to_hbm [thread:$0]  %s2990_s26, 32, %s4500_s11, [#allocation4]  }
 0x46f   :  { %s3864_s5 = smov [#allocation11]  }
 0x470   :  { %s2999_s30 = sshll.u32 %s3864_s5, 4  ;;  %s3000_s30 = int_to_ptr.vmem [resolvable:$true] %s2999_s30 }
 0x471   :  { %s3822_s6 = scalar_lea.vmem %s3000_s30, 32  ;;  %p3827_p12 = scmp.lt.s32.totalorder %s3000_s30, %s3000_s30 }
 0x472   :  { %p3823_p11 = scmp.ne.s32.totalorder %s3000_s30, %s3822_s6  ;;  %p3828_p13 = scmp.lt.s32.totalorder %s3822_s6, %s3822_s6 }
 0x474   :  { %p3829_p0 = por %p3828_p13, %p3827_p12 }
 0x476   :  { %p3830_p1 = pnand %p3829_p0, %p3823_p11 }
 0x4f5   :  { %v2964_v33 = vpop.xlane.xlu0 %2963 }
 0x4f6   :  { %3718 = vrcp.f32 %v2964_v33 }
 0x4f7   :  { %3720 = vlog2.f32 %v2964_v33 }
 0x503   :  { %v3719_v54 = vpop.eup %3718 }
 0x504   :  { %v3721_v12 = vpop.eup %3720  ;;  %v2966_v9 = vmul.f32 %v3719_v54, %v3717_v52 }
 0x505   :  { %v2969_v25 = vmul.f32 0.6931472, %v3721_v12 }
 0x506   :  { %2967 = vst.msk [vmem:[#allocation11] sm:$0x3] %vm2954_vm9, %v2966_v9 }
 0x507   :  { %v2970_v17 = vadd.f32 %v2969_v25, %v2958_v14 }
 0x508   :  { %3833 = shalt.err (!%p3830_p1)
}
 0x509   :  { %3002 = dma.vmem_to_hbm [thread:$0]  %s3000_s30, 32, %s4501_s12, [#allocation12]   ;;  %v2979_v55 = vpop.xlane.xlu1 %2978  ;;  %vm2981_vm11 = vcmask 1024  }
 0x50a   :  { %v2980_v11 = vsub.f32 %v2970_v17, %v2979_v55 }
 0x50c   :  { %2982 = vst.msk [vmem:[%s4502_s13] sm:$0x3] %vm2981_vm11, %v2980_v11 }
 0x50d   :  { %3848 = dma.done.wait [#allocation4], 32  }
 0x50e   :  { %3849 = vsyncadd [#allocation4], 4294967264 }
 0x50f   :  { %3850 = dma.done.wait [#allocation12], 32  }
 0x510   :  { %3851 = vsyncadd [#allocation12], 4294967264 }
 0x511   :  { %3013 = vsyncpa [#allocation3], 1 }
 0x512   :  { %3014 = vsyncpa [#allocation6], 1 }
 0x513   :  { %3015 = vsyncpa [#allocation9], 1 }
 0x514   :  { %3016 = vsyncpa [#allocation4], 1 }
 0x515   :  { %3017 = vsyncpa [#allocation12], 1 }

</bundles_post_ra>
